<compile_context>
chip_gen: v7x
topology: tpu7x:2x2x1
jax: 0.10.0
libtpu: 0.0.40
codegen_flags: <defaults>
</compile_context>

<pallas_src>
import functools

import jax
import jax.numpy as jnp
from jax import lax
from jax.experimental import pallas as pl
from jax.experimental.pallas import tpu as pltpu


def _vmem_limit_bytes(h, w):
    # Generous per-image footprint estimate (double-buffered input block,
    # padded scratch, Mosaic value temporaries), clamped to stay within every
    # generation's physical VMEM (v7x: 64 MiB).
    need = 16 * h * w * 4 + (1 << 20)
    return int(min(max(need, 32 << 20), 48 << 20))


# -----------------------------------------------------------------------------
# Kernel 1: simple_nms + border zeroing + in-kernel top-K (separable max-pool)
# -----------------------------------------------------------------------------
def _nms_topk_kernel(s_ref, idx_ref, padc_ref, padr_ref, *, radius, top_k):
    x = s_ref[0]  # (H, W) f32
    H, W = x.shape
    ks = 2 * radius + 1
    neg_inf = jnp.float32(-jnp.inf)

    # -inf border STRIPS only (the interiors are rewritten by every maxpool
    # call below, so a full-buffer refill would be redundant stores).
    padc_ref[:, 0:radius] = jnp.full((H, radius), neg_inf, jnp.float32)
    padc_ref[:, radius + W:radius + W + radius] = jnp.full(
        (H, radius), neg_inf, jnp.float32)
    padr_ref[0:radius, :] = jnp.full((radius, W), neg_inf, jnp.float32)
    padr_ref[radius + H:radius + H + radius, :] = jnp.full(
        (radius, W), neg_inf, jnp.float32)

    def maxpool(v):
        # Separable (2r+1)x(2r+1) max pool, stride 1, -inf padding
        # (matches torch.nn.functional.max_pool2d padding semantics).
        # TODO(synk): switch the lane-direction shifts to pltpu.roll (+ edge
        #             mask) with a doubling max composition once rotate
        #             lowering for non-128-multiple widths is verified; the
        #             padded-scratch misaligned reads below are the proven path.
        padc_ref[:, radius:radius + W] = v
        rowmax = padc_ref[:, 0:W]
        for dx in range(1, ks):                      # lane-direction shifts
            rowmax = jnp.maximum(rowmax, padc_ref[:, dx:dx + W])
        padr_ref[radius:radius + H, :] = rowmax
        out = padr_ref[0:H, :]
        for dy in range(1, ks):                      # sublane-direction shifts
            out = jnp.maximum(out, padr_ref[dy:dy + H, :])
        return out

    zeros = jnp.zeros_like(x)
    max_mask = x == maxpool(x)
    for _ in range(2):
        supp_mask = maxpool(max_mask.astype(jnp.float32)) > 0
        supp_scores = jnp.where(supp_mask, zeros, x)
        new_max_mask = supp_scores == maxpool(supp_scores)
        max_mask = max_mask | (new_max_mask & jnp.logical_not(supp_mask))

    # border zeroing fused into the final masking
    rows_i = lax.broadcasted_iota(jnp.int32, (H, W), 0)
    cols_i = lax.broadcasted_iota(jnp.int32, (H, W), 1)
    keep = (rows_i >= radius) & (rows_i < H - radius) & \
           (cols_i >= radius) & (cols_i < W - radius)
    nms = jnp.where(max_mask & keep, x, zeros)

    # In-kernel top-K: iterative argmax over the VMEM-resident NMS map.
    # Ties break on the smallest flat index (torch.topk tie order is
    # unspecified; both only matter for meaningless zero-score fill keypoints).
    idx_ref[...] = jnp.zeros((1, 1, 128), jnp.int32)
    flat = rows_i * W + cols_i
    big = jnp.int32(2 ** 30)
    work = nms
    for k in range(top_k):
        m = jnp.max(jnp.max(work, axis=1, keepdims=True),
                    axis=0, keepdims=True)                      # (1, 1)
        cand = jnp.where(work == m, flat, big)
        idx = jnp.min(jnp.min(cand, axis=1, keepdims=True),
                      axis=0, keepdims=True)                    # (1, 1) int32
        idx_ref[0, 0:1, k:k + 1] = idx
        work = jnp.where(flat == idx, neg_inf, work)


def nms_topk_pallas(scores, radius, top_k):
    """scores: (B, H, W) f32 -> (B, 1, 128) int32, flat top-K indices in
    lanes [0, top_k)."""
    B, H, W = scores.shape
    assert top_k <= 128
    kernel = functools.partial(_nms_topk_kernel, radius=radius, top_k=top_k)
    # TODO(synk): for very large maps (>= ~1280^2 on v7x) add a row-tiled
    #             second grid axis with a 2*radius halo so the per-image block
    #             fits scoped VMEM and both v7x TensorCores get work at B==1.
    return pl.pallas_call(
        kernel,
        out_shape=jax.ShapeDtypeStruct((B, 1, 128), jnp.int32),
        grid_spec=pltpu.PrefetchScalarGridSpec(
            num_scalar_prefetch=0,
            grid=(B,),
            in_specs=[pl.BlockSpec((1, H, W), lambda b: (b, 0, 0))],
            out_specs=pl.BlockSpec((1, 1, 128), lambda b: (b, 0, 0)),
            scratch_shapes=[
                pltpu.VMEM((H, W + 2 * radius), jnp.float32),
                pltpu.VMEM((H + 2 * radius, W), jnp.float32),
            ],
        ),
        compiler_params=pltpu.CompilerParams(
            dimension_semantics=("parallel",),
            vmem_limit_bytes=_vmem_limit_bytes(H, W)),
    )(scores)


# -----------------------------------------------------------------------------
# Kernel 2: fused patch gather + soft-argmax + dispersity + bilinear sample
# -----------------------------------------------------------------------------
def _refine_kernel(ys_ref, xs_ref, s_ref, o_ref, pad_ref, *,
                   radius, temperature, top_k, H, W):
    ks = 2 * radius + 1
    Wp = W + 2 * radius
    neg_inf = jnp.float32(-jnp.inf)
    b = pl.program_id(0)

    # Zero-padded copy of this image's score map.  Zero padding matches both
    # nn.Unfold(padding=radius) and grid_sample(padding_mode='zeros').
    # Border strips only; the interior comes straight from the input block.
    pad_ref[0:radius, :] = jnp.zeros((radius, Wp), jnp.float32)
    pad_ref[radius + H:radius + H + radius, :] = jnp.zeros(
        (radius, Wp), jnp.float32)
    pad_ref[radius:radius + H, 0:radius] = jnp.zeros((H, radius), jnp.float32)
    pad_ref[radius:radius + H, radius + W:radius + W + radius] = jnp.zeros(
        (H, radius), jnp.float32)
    pad_ref[radius:radius + H, radius:radius + W] = s_ref[0]

    o_ref[...] = jnp.zeros((1, 4, 128), jnp.float32)

    jlane = lax.broadcasted_iota(jnp.int32, (ks, Wp), 1)
    gy = (lax.broadcasted_iota(jnp.int32, (ks, Wp), 0) - radius
          ).astype(jnp.float32)                                  # row offsets
    inv_r2 = 1.0 / float(radius * radius)

    for k in range(top_k):
        n = b * top_k + k
        y0 = ys_ref[n]                      # SMEM scalars (scalar prefetch)
        x0 = xs_ref[n]

        # (ks, Wp) band of rows centered on the keypoint (dynamic sublane ds).
        rows = pad_ref[pl.ds(y0, ks), :]

        gx = (jlane - radius - x0).astype(jnp.float32)     # col offset from kp
        inwin = (jlane >= x0) & (jlane <= x0 + 2 * radius)  # the 5x5 window

        # soft-argmax over the 5x5 window (exp only sees <= 0 arguments).
        masked = jnp.where(inwin, rows, neg_inf)
        max_v = jnp.max(jnp.max(masked, axis=1, keepdims=True),
                        axis=0, keepdims=True)
        x_exp = jnp.exp((masked - max_v) / temperature)    # 0 outside window
        ssum = jnp.sum(jnp.sum(x_exp, axis=1, keepdims=True),
                       axis=0, keepdims=True)
        inv_ssum = 1.0 / ssum                              # exact (parity)

        rx = jnp.sum(jnp.sum(x_exp * gx, axis=1, keepdims=True),
                     axis=0, keepdims=True) * inv_ssum
        ry = jnp.sum(jnp.sum(x_exp * gy, axis=1, keepdims=True),
                     axis=0, keepdims=True) * inv_ssum

        # score dispersity: sum(softmax * ||(g - res)/radius||^2)
        dist2 = ((gx - rx) ** 2 + (gy - ry) ** 2) * inv_r2
        disp = jnp.sum(jnp.sum(x_exp * dist2, axis=1, keepdims=True),
                       axis=0, keepdims=True) * inv_ssum

        # bilinear grid_sample (align_corners=True, zero padding): the hat
        # weights vanish outside the 5x5 window, so an unmasked weighted sum
        # over the padded row band is exact.
        wx = jnp.maximum(0.0, 1.0 - jnp.abs(rx - gx))
        wy = jnp.maximum(0.0, 1.0 - jnp.abs(ry - gy))
        sc = jnp.sum(jnp.sum(rows * wx * wy, axis=1, keepdims=True),
                     axis=0, keepdims=True)

        # refined keypoints normalized to [-1, 1]
        xn = (x0.astype(jnp.float32) + rx) * (2.0 / float(W - 1)) - 1.0
        yn = (y0.astype(jnp.float32) + ry) * (2.0 / float(H - 1)) - 1.0

        o_ref[0, 0:1, k:k + 1] = xn
        o_ref[0, 1:2, k:k + 1] = yn
        o_ref[0, 2:3, k:k + 1] = disp
        o_ref[0, 3:4, k:k + 1] = sc


def subpixel_refine_pallas(scores, ys, xs, *, radius, temperature, top_k):
    """scores: (B, H, W) f32; ys/xs: (B*top_k,) int32.
    Returns (B, 4, 128) f32 with rows (x_norm, y_norm, dispersity, score)."""
    B, H, W = scores.shape
    assert top_k <= 128
    kernel = functools.partial(_refine_kernel, radius=radius,
                               temperature=temperature, top_k=top_k, H=H, W=W)
    return pl.pallas_call(
        kernel,
        out_shape=jax.ShapeDtypeStruct((B, 4, 128), jnp.float32),
        grid_spec=pltpu.PrefetchScalarGridSpec(
            num_scalar_prefetch=2,
            grid=(B,),
            in_specs=[pl.BlockSpec((1, H, W), lambda b, ys, xs: (b, 0, 0))],
            out_specs=pl.BlockSpec((1, 4, 128), lambda b, ys, xs: (b, 0, 0)),
            scratch_shapes=[
                pltpu.VMEM((H + 2 * radius, W + 2 * radius), jnp.float32),
            ],
        ),
        compiler_params=pltpu.CompilerParams(
            dimension_semantics=("parallel",),
            vmem_limit_bytes=_vmem_limit_bytes(H, W)),
    )(ys, xs, scores)


# -----------------------------------------------------------------------------
# Glue: DKD forward (top_k mode, sub_pixel=True)
# -----------------------------------------------------------------------------
def dkd_forward(scores_map, *, radius=2, top_k=8, temperature=0.1):
    """scores_map: (B, 1, H, W) f32 (NCHW).  Returns (keypoints, kptscores,
    scoredispersitys) as lists of per-image arrays, mirroring the PyTorch API."""
    B, C, H, W = scores_map.shape
    assert C == 1 and top_k > 0
    scores = scores_map[:, 0].astype(jnp.float32)               # (B, H, W)

    # --- NMS + border zero + top-K (Pallas kernel 1, no NMS-map writeback) ---
    idx_slab = nms_topk_pallas(scores, radius, top_k)           # (B, 1, 128)
    idx = idx_slab[:, 0, :top_k]                                # (B, K) int32
    ys = (idx // W).reshape(-1).astype(jnp.int32)               # (B*K,)
    xs = (idx % W).reshape(-1).astype(jnp.int32)

    # --- fused patch gather + sub-pixel refinement (Pallas kernel 2) ---
    out = subpixel_refine_pallas(scores, ys, xs, radius=radius,
                                 temperature=temperature, top_k=top_k)
    res = out[:, :, :top_k]                                     # (B, 4, K)
    keypoints = jnp.stack([res[:, 0], res[:, 1]], axis=-1)      # (B, K, 2)
    disp = res[:, 2]                                            # (B, K)
    kptscore = res[:, 3]                                        # (B, K)

    kp_list = [keypoints[b] for b in range(B)]
    sc_list = [kptscore[b] for b in range(B)]
    disp_list = [disp[b] for b in range(B)]
    return kp_list, sc_list, disp_list


if __name__ == "__main__":
    key = jax.random.PRNGKey(0)
    B, C, H, W = 2, 1, 16, 16
    # score maps in [0, 1] like ALIKED's sigmoid output
    scores_map = jax.nn.sigmoid(
        jax.random.normal(key, (B, C, H, W), dtype=jnp.float32))

    kps, kscores, disps = dkd_forward(scores_map, radius=2, top_k=8,
                                      temperature=0.1)
    for arr in (*kps, *kscores, *disps):
        jax.block_until_ready(arr)

    assert kps[0].shape == (8, 2) and kscores[0].shape == (8,)
    assert disps[0].shape == (8,)
    assert all(bool(jnp.all(jnp.isfinite(a))) for a in (*kps, *kscores, *disps))
    print("KERNEL_OK")
</pallas_src>

<mosaic_0001>
module attributes {stable_mosaic.version = 11 : i64} {
  func.func @_nms_topk_kernel(%arg0: i32, %arg1: memref<1x16x16xf32, #tpu.memory_space<vmem>>, %arg2: memref<1x1x128xi32, #tpu.memory_space<vmem>>, %arg3: memref<16x20xf32, #tpu.memory_space<vmem>>, %arg4: memref<20x16xf32, #tpu.memory_space<vmem>>) attributes {dimension_semantics = [#tpu.dimension_semantics<parallel>], iteration_bounds = array<i64: 2>, scalar_prefetch = 0 : i64, scratch_operands = 2 : i64, tpu.core_type = #tpu.core_type<tc>, window_params = [{transform_indices = @transform_0, window_bounds = array<i64: 1, 16, 16>}, {transform_indices = @transform_1, window_bounds = array<i64: 1, 1, 128>}]} {
    %c0 = arith.constant 0 : index
    %c0_0 = arith.constant 0 : index
    %c0_1 = arith.constant 0 : index
    %0 = vector.load %arg1[%c0, %c0_0, %c0_1] : memref<1x16x16xf32, #tpu.memory_space<vmem>>, vector<1x16x16xf32>
    %1 = vector.shape_cast %0 : vector<1x16x16xf32> to vector<16x16xf32>
    %cst = arith.constant 0xFF800000 : f32
    %2 = vector.broadcast %cst : f32 to vector<16x2xf32>
    %c0_2 = arith.constant 0 : index
    %c0_3 = arith.constant 0 : index
    %3 = vector.load %arg3[%c0_2, %c0_3] : memref<16x20xf32, #tpu.memory_space<vmem>>, vector<16x2xf32>
    tpu.vector_store %arg3[%c0_2, %c0_3], %2 {strides = array<i32>} : memref<16x20xf32, #tpu.memory_space<vmem>>, vector<16x2xf32>,
    %cst_4 = arith.constant 0xFF800000 : f32
    %4 = vector.broadcast %cst_4 : f32 to vector<16x2xf32>
    %c0_5 = arith.constant 0 : index
    %c18 = arith.constant 18 : index
    %5 = vector.load %arg3[%c0_5, %c18] : memref<16x20xf32, #tpu.memory_space<vmem>>, vector<16x2xf32>
    tpu.vector_store %arg3[%c0_5, %c18], %4 {strides = array<i32>} : memref<16x20xf32, #tpu.memory_space<vmem>>, vector<16x2xf32>,
    %cst_6 = arith.constant 0xFF800000 : f32
    %6 = vector.broadcast %cst_6 : f32 to vector<2x16xf32>
    %c0_7 = arith.constant 0 : index
    %c0_8 = arith.constant 0 : index
    %7 = vector.load %arg4[%c0_7, %c0_8] : memref<20x16xf32, #tpu.memory_space<vmem>>, vector<2x16xf32>
    tpu.vector_store %arg4[%c0_7, %c0_8], %6 {strides = array<i32>} : memref<20x16xf32, #tpu.memory_space<vmem>>, vector<2x16xf32>,
    %cst_9 = arith.constant 0xFF800000 : f32
    %8 = vector.broadcast %cst_9 : f32 to vector<2x16xf32>
    %c18_10 = arith.constant 18 : index
    %c0_11 = arith.constant 0 : index
    %9 = vector.load %arg4[%c18_10, %c0_11] : memref<20x16xf32, #tpu.memory_space<vmem>>, vector<2x16xf32>
    tpu.vector_store %arg4[%c18_10, %c0_11], %8 {strides = array<i32>} : memref<20x16xf32, #tpu.memory_space<vmem>>, vector<2x16xf32>,
    %cst_12 = arith.constant 0.000000e+00 : f32
    %10 = vector.broadcast %cst_12 : f32 to vector<16x16xf32>
    %c0_13 = arith.constant 0 : index
    %c2 = arith.constant 2 : index
    %11 = vector.load %arg3[%c0_13, %c2] : memref<16x20xf32, #tpu.memory_space<vmem>>, vector<16x16xf32>
    tpu.vector_store %arg3[%c0_13, %c2], %1 {strides = array<i32>} : memref<16x20xf32, #tpu.memory_space<vmem>>, vector<16x16xf32>,
    %c0_14 = arith.constant 0 : index
    %c0_15 = arith.constant 0 : index
    %12 = vector.load %arg3[%c0_14, %c0_15] : memref<16x20xf32, #tpu.memory_space<vmem>>, vector<16x16xf32>
    %c0_16 = arith.constant 0 : index
    %c1 = arith.constant 1 : index
    %13 = vector.load %arg3[%c0_16, %c1] : memref<16x20xf32, #tpu.memory_space<vmem>>, vector<16x16xf32>
    %14 = arith.maximumf %12, %13 : vector<16x16xf32>
    %c0_17 = arith.constant 0 : index
    %c2_18 = arith.constant 2 : index
    %15 = vector.load %arg3[%c0_17, %c2_18] : memref<16x20xf32, #tpu.memory_space<vmem>>, vector<16x16xf32>
    %16 = arith.maximumf %14, %15 : vector<16x16xf32>
    %c0_19 = arith.constant 0 : index
    %c3 = arith.constant 3 : index
    %17 = vector.load %arg3[%c0_19, %c3] : memref<16x20xf32, #tpu.memory_space<vmem>>, vector<16x16xf32>
    %18 = arith.maximumf %16, %17 : vector<16x16xf32>
    %c0_20 = arith.constant 0 : index
    %c4 = arith.constant 4 : index
    %19 = vector.load %arg3[%c0_20, %c4] : memref<16x20xf32, #tpu.memory_space<vmem>>, vector<16x16xf32>
    %20 = arith.maximumf %18, %19 : vector<16x16xf32>
    %c2_21 = arith.constant 2 : index
    %c0_22 = arith.constant 0 : index
    %21 = vector.load %arg4[%c2_21, %c0_22] : memref<20x16xf32, #tpu.memory_space<vmem>>, vector<16x16xf32>
    tpu.vector_store %arg4[%c2_21, %c0_22], %20 {strides = array<i32>} : memref<20x16xf32, #tpu.memory_space<vmem>>, vector<16x16xf32>,
    %c0_23 = arith.constant 0 : index
    %c0_24 = arith.constant 0 : index
    %22 = vector.load %arg4[%c0_23, %c0_24] : memref<20x16xf32, #tpu.memory_space<vmem>>, vector<16x16xf32>
    %c1_25 = arith.constant 1 : index
    %c0_26 = arith.constant 0 : index
    %23 = vector.load %arg4[%c1_25, %c0_26] : memref<20x16xf32, #tpu.memory_space<vmem>>, vector<16x16xf32>
    %24 = arith.maximumf %22, %23 : vector<16x16xf32>
    %c2_27 = arith.constant 2 : index
    %c0_28 = arith.constant 0 : index
    %25 = vector.load %arg4[%c2_27, %c0_28] : memref<20x16xf32, #tpu.memory_space<vmem>>, vector<16x16xf32>
    %26 = arith.maximumf %24, %25 : vector<16x16xf32>
    %c3_29 = arith.constant 3 : index
    %c0_30 = arith.constant 0 : index
    %27 = vector.load %arg4[%c3_29, %c0_30] : memref<20x16xf32, #tpu.memory_space<vmem>>, vector<16x16xf32>
    %28 = arith.maximumf %26, %27 : vector<16x16xf32>
    %c4_31 = arith.constant 4 : index
    %c0_32 = arith.constant 0 : index
    %29 = vector.load %arg4[%c4_31, %c0_32] : memref<20x16xf32, #tpu.memory_space<vmem>>, vector<16x16xf32>
    %30 = arith.maximumf %28, %29 : vector<16x16xf32>
    %31 = arith.cmpf oeq, %1, %30 : vector<16x16xf32>
    %32 = arith.extui %31 : vector<16x16xi1> to vector<16x16xi32>
    %33 = arith.sitofp %32 : vector<16x16xi32> to vector<16x16xf32>
    %c0_33 = arith.constant 0 : index
    %c2_34 = arith.constant 2 : index
    %34 = vector.load %arg3[%c0_33, %c2_34] : memref<16x20xf32, #tpu.memory_space<vmem>>, vector<16x16xf32>
    tpu.vector_store %arg3[%c0_33, %c2_34], %33 {strides = array<i32>} : memref<16x20xf32, #tpu.memory_space<vmem>>, vector<16x16xf32>,
    %c0_35 = arith.constant 0 : index
    %c0_36 = arith.constant 0 : index
    %35 = vector.load %arg3[%c0_35, %c0_36] : memref<16x20xf32, #tpu.memory_space<vmem>>, vector<16x16xf32>
    %c0_37 = arith.constant 0 : index
    %c1_38 = arith.constant 1 : index
    %36 = vector.load %arg3[%c0_37, %c1_38] : memref<16x20xf32, #tpu.memory_space<vmem>>, vector<16x16xf32>
    %37 = arith.maximumf %35, %36 : vector<16x16xf32>
    %c0_39 = arith.constant 0 : index
    %c2_40 = arith.constant 2 : index
    %38 = vector.load %arg3[%c0_39, %c2_40] : memref<16x20xf32, #tpu.memory_space<vmem>>, vector<16x16xf32>
    %39 = arith.maximumf %37, %38 : vector<16x16xf32>
    %c0_41 = arith.constant 0 : index
    %c3_42 = arith.constant 3 : index
    %40 = vector.load %arg3[%c0_41, %c3_42] : memref<16x20xf32, #tpu.memory_space<vmem>>, vector<16x16xf32>
    %41 = arith.maximumf %39, %40 : vector<16x16xf32>
    %c0_43 = arith.constant 0 : index
    %c4_44 = arith.constant 4 : index
    %42 = vector.load %arg3[%c0_43, %c4_44] : memref<16x20xf32, #tpu.memory_space<vmem>>, vector<16x16xf32>
    %43 = arith.maximumf %41, %42 : vector<16x16xf32>
    %c2_45 = arith.constant 2 : index
    %c0_46 = arith.constant 0 : index
    %44 = vector.load %arg4[%c2_45, %c0_46] : memref<20x16xf32, #tpu.memory_space<vmem>>, vector<16x16xf32>
    tpu.vector_store %arg4[%c2_45, %c0_46], %43 {strides = array<i32>} : memref<20x16xf32, #tpu.memory_space<vmem>>, vector<16x16xf32>,
    %c0_47 = arith.constant 0 : index
    %c0_48 = arith.constant 0 : index
    %45 = vector.load %arg4[%c0_47, %c0_48] : memref<20x16xf32, #tpu.memory_space<vmem>>, vector<16x16xf32>
    %c1_49 = arith.constant 1 : index
    %c0_50 = arith.constant 0 : index
    %46 = vector.load %arg4[%c1_49, %c0_50] : memref<20x16xf32, #tpu.memory_space<vmem>>, vector<16x16xf32>
    %47 = arith.maximumf %45, %46 : vector<16x16xf32>
    %c2_51 = arith.constant 2 : index
    %c0_52 = arith.constant 0 : index
    %48 = vector.load %arg4[%c2_51, %c0_52] : memref<20x16xf32, #tpu.memory_space<vmem>>, vector<16x16xf32>
    %49 = arith.maximumf %47, %48 : vector<16x16xf32>
    %c3_53 = arith.constant 3 : index
    %c0_54 = arith.constant 0 : index
    %50 = vector.load %arg4[%c3_53, %c0_54] : memref<20x16xf32, #tpu.memory_space<vmem>>, vector<16x16xf32>
    %51 = arith.maximumf %49, %50 : vector<16x16xf32>
    %c4_55 = arith.constant 4 : index
    %c0_56 = arith.constant 0 : index
    %52 = vector.load %arg4[%c4_55, %c0_56] : memref<20x16xf32, #tpu.memory_space<vmem>>, vector<16x16xf32>
    %53 = arith.maximumf %51, %52 : vector<16x16xf32>
    %cst_57 = arith.constant 0.000000e+00 : f32
    %54 = vector.broadcast %cst_57 : f32 to vector<16x16xf32>
    %55 = arith.cmpf ogt, %53, %54 : vector<16x16xf32>
    %56 = arith.select %55, %10, %1 : vector<16x16xi1>, vector<16x16xf32>
    %c0_58 = arith.constant 0 : index
    %c2_59 = arith.constant 2 : index
    %57 = vector.load %arg3[%c0_58, %c2_59] : memref<16x20xf32, #tpu.memory_space<vmem>>, vector<16x16xf32>
    tpu.vector_store %arg3[%c0_58, %c2_59], %56 {strides = array<i32>} : memref<16x20xf32, #tpu.memory_space<vmem>>, vector<16x16xf32>,
    %c0_60 = arith.constant 0 : index
    %c0_61 = arith.constant 0 : index
    %58 = vector.load %arg3[%c0_60, %c0_61] : memref<16x20xf32, #tpu.memory_space<vmem>>, vector<16x16xf32>
    %c0_62 = arith.constant 0 : index
    %c1_63 = arith.constant 1 : index
    %59 = vector.load %arg3[%c0_62, %c1_63] : memref<16x20xf32, #tpu.memory_space<vmem>>, vector<16x16xf32>
    %60 = arith.maximumf %58, %59 : vector<16x16xf32>
    %c0_64 = arith.constant 0 : index
    %c2_65 = arith.constant 2 : index
    %61 = vector.load %arg3[%c0_64, %c2_65] : memref<16x20xf32, #tpu.memory_space<vmem>>, vector<16x16xf32>
    %62 = arith.maximumf %60, %61 : vector<16x16xf32>
    %c0_66 = arith.constant 0 : index
    %c3_67 = arith.constant 3 : index
    %63 = vector.load %arg3[%c0_66, %c3_67] : memref<16x20xf32, #tpu.memory_space<vmem>>, vector<16x16xf32>
    %64 = arith.maximumf %62, %63 : vector<16x16xf32>
    %c0_68 = arith.constant 0 : index
    %c4_69 = arith.constant 4 : index
    %65 = vector.load %arg3[%c0_68, %c4_69] : memref<16x20xf32, #tpu.memory_space<vmem>>, vector<16x16xf32>
    %66 = arith.maximumf %64, %65 : vector<16x16xf32>
    %c2_70 = arith.constant 2 : index
    %c0_71 = arith.constant 0 : index
    %67 = vector.load %arg4[%c2_70, %c0_71] : memref<20x16xf32, #tpu.memory_space<vmem>>, vector<16x16xf32>
    tpu.vector_store %arg4[%c2_70, %c0_71], %66 {strides = array<i32>} : memref<20x16xf32, #tpu.memory_space<vmem>>, vector<16x16xf32>,
    %c0_72 = arith.constant 0 : index
    %c0_73 = arith.constant 0 : index
    %68 = vector.load %arg4[%c0_72, %c0_73] : memref<20x16xf32, #tpu.memory_space<vmem>>, vector<16x16xf32>
    %c1_74 = arith.constant 1 : index
    %c0_75 = arith.constant 0 : index
    %69 = vector.load %arg4[%c1_74, %c0_75] : memref<20x16xf32, #tpu.memory_space<vmem>>, vector<16x16xf32>
    %70 = arith.maximumf %68, %69 : vector<16x16xf32>
    %c2_76 = arith.constant 2 : index
    %c0_77 = arith.constant 0 : index
    %71 = vector.load %arg4[%c2_76, %c0_77] : memref<20x16xf32, #tpu.memory_space<vmem>>, vector<16x16xf32>
    %72 = arith.maximumf %70, %71 : vector<16x16xf32>
    %c3_78 = arith.constant 3 : index
    %c0_79 = arith.constant 0 : index
    %73 = vector.load %arg4[%c3_78, %c0_79] : memref<20x16xf32, #tpu.memory_space<vmem>>, vector<16x16xf32>
    %74 = arith.maximumf %72, %73 : vector<16x16xf32>
    %c4_80 = arith.constant 4 : index
    %c0_81 = arith.constant 0 : index
    %75 = vector.load %arg4[%c4_80, %c0_81] : memref<20x16xf32, #tpu.memory_space<vmem>>, vector<16x16xf32>
    %76 = arith.maximumf %74, %75 : vector<16x16xf32>
    %77 = arith.cmpf oeq, %56, %76 : vector<16x16xf32>
    %cst_82 = arith.constant dense<true> : vector<16x16xi1>
    %78 = arith.xori %55, %cst_82 : vector<16x16xi1>
    %79 = arith.andi %77, %78 : vector<16x16xi1>
    %80 = arith.ori %31, %79 : vector<16x16xi1>
    %81 = arith.extui %80 : vector<16x16xi1> to vector<16x16xi32>
    %82 = arith.sitofp %81 : vector<16x16xi32> to vector<16x16xf32>
    %c0_83 = arith.constant 0 : index
    %c2_84 = arith.constant 2 : index
    %83 = vector.load %arg3[%c0_83, %c2_84] : memref<16x20xf32, #tpu.memory_space<vmem>>, vector<16x16xf32>
    tpu.vector_store %arg3[%c0_83, %c2_84], %82 {strides = array<i32>} : memref<16x20xf32, #tpu.memory_space<vmem>>, vector<16x16xf32>,
    %c0_85 = arith.constant 0 : index
    %c0_86 = arith.constant 0 : index
    %84 = vector.load %arg3[%c0_85, %c0_86] : memref<16x20xf32, #tpu.memory_space<vmem>>, vector<16x16xf32>
    %c0_87 = arith.constant 0 : index
    %c1_88 = arith.constant 1 : index
    %85 = vector.load %arg3[%c0_87, %c1_88] : memref<16x20xf32, #tpu.memory_space<vmem>>, vector<16x16xf32>
    %86 = arith.maximumf %84, %85 : vector<16x16xf32>
    %c0_89 = arith.constant 0 : index
    %c2_90 = arith.constant 2 : index
    %87 = vector.load %arg3[%c0_89, %c2_90] : memref<16x20xf32, #tpu.memory_space<vmem>>, vector<16x16xf32>
    %88 = arith.maximumf %86, %87 : vector<16x16xf32>
    %c0_91 = arith.constant 0 : index
    %c3_92 = arith.constant 3 : index
    %89 = vector.load %arg3[%c0_91, %c3_92] : memref<16x20xf32, #tpu.memory_space<vmem>>, vector<16x16xf32>
    %90 = arith.maximumf %88, %89 : vector<16x16xf32>
    %c0_93 = arith.constant 0 : index
    %c4_94 = arith.constant 4 : index
    %91 = vector.load %arg3[%c0_93, %c4_94] : memref<16x20xf32, #tpu.memory_space<vmem>>, vector<16x16xf32>
    %92 = arith.maximumf %90, %91 : vector<16x16xf32>
    %c2_95 = arith.constant 2 : index
    %c0_96 = arith.constant 0 : index
    %93 = vector.load %arg4[%c2_95, %c0_96] : memref<20x16xf32, #tpu.memory_space<vmem>>, vector<16x16xf32>
    tpu.vector_store %arg4[%c2_95, %c0_96], %92 {strides = array<i32>} : memref<20x16xf32, #tpu.memory_space<vmem>>, vector<16x16xf32>,
    %c0_97 = arith.constant 0 : index
    %c0_98 = arith.constant 0 : index
    %94 = vector.load %arg4[%c0_97, %c0_98] : memref<20x16xf32, #tpu.memory_space<vmem>>, vector<16x16xf32>
    %c1_99 = arith.constant 1 : index
    %c0_100 = arith.constant 0 : index
    %95 = vector.load %arg4[%c1_99, %c0_100] : memref<20x16xf32, #tpu.memory_space<vmem>>, vector<16x16xf32>
    %96 = arith.maximumf %94, %95 : vector<16x16xf32>
    %c2_101 = arith.constant 2 : index
    %c0_102 = arith.constant 0 : index
    %97 = vector.load %arg4[%c2_101, %c0_102] : memref<20x16xf32, #tpu.memory_space<vmem>>, vector<16x16xf32>
    %98 = arith.maximumf %96, %97 : vector<16x16xf32>
    %c3_103 = arith.constant 3 : index
    %c0_104 = arith.constant 0 : index
    %99 = vector.load %arg4[%c3_103, %c0_104] : memref<20x16xf32, #tpu.memory_space<vmem>>, vector<16x16xf32>
    %100 = arith.maximumf %98, %99 : vector<16x16xf32>
    %c4_105 = arith.constant 4 : index
    %c0_106 = arith.constant 0 : index
    %101 = vector.load %arg4[%c4_105, %c0_106] : memref<20x16xf32, #tpu.memory_space<vmem>>, vector<16x16xf32>
    %102 = arith.maximumf %100, %101 : vector<16x16xf32>
    %cst_107 = arith.constant 0.000000e+00 : f32
    %103 = vector.broadcast %cst_107 : f32 to vector<16x16xf32>
    %104 = arith.cmpf ogt, %102, %103 : vector<16x16xf32>
    %105 = arith.select %104, %10, %1 : vector<16x16xi1>, vector<16x16xf32>
    %c0_108 = arith.constant 0 : index
    %c2_109 = arith.constant 2 : index
    %106 = vector.load %arg3[%c0_108, %c2_109] : memref<16x20xf32, #tpu.memory_space<vmem>>, vector<16x16xf32>
    tpu.vector_store %arg3[%c0_108, %c2_109], %105 {strides = array<i32>} : memref<16x20xf32, #tpu.memory_space<vmem>>, vector<16x16xf32>,
    %c0_110 = arith.constant 0 : index
    %c0_111 = arith.constant 0 : index
    %107 = vector.load %arg3[%c0_110, %c0_111] : memref<16x20xf32, #tpu.memory_space<vmem>>, vector<16x16xf32>
    %c0_112 = arith.constant 0 : index
    %c1_113 = arith.constant 1 : index
    %108 = vector.load %arg3[%c0_112, %c1_113] : memref<16x20xf32, #tpu.memory_space<vmem>>, vector<16x16xf32>
    %109 = arith.maximumf %107, %108 : vector<16x16xf32>
    %c0_114 = arith.constant 0 : index
    %c2_115 = arith.constant 2 : index
    %110 = vector.load %arg3[%c0_114, %c2_115] : memref<16x20xf32, #tpu.memory_space<vmem>>, vector<16x16xf32>
    %111 = arith.maximumf %109, %110 : vector<16x16xf32>
    %c0_116 = arith.constant 0 : index
    %c3_117 = arith.constant 3 : index
    %112 = vector.load %arg3[%c0_116, %c3_117] : memref<16x20xf32, #tpu.memory_space<vmem>>, vector<16x16xf32>
    %113 = arith.maximumf %111, %112 : vector<16x16xf32>
    %c0_118 = arith.constant 0 : index
    %c4_119 = arith.constant 4 : index
    %114 = vector.load %arg3[%c0_118, %c4_119] : memref<16x20xf32, #tpu.memory_space<vmem>>, vector<16x16xf32>
    %115 = arith.maximumf %113, %114 : vector<16x16xf32>
    %c2_120 = arith.constant 2 : index
    %c0_121 = arith.constant 0 : index
    %116 = vector.load %arg4[%c2_120, %c0_121] : memref<20x16xf32, #tpu.memory_space<vmem>>, vector<16x16xf32>
    tpu.vector_store %arg4[%c2_120, %c0_121], %115 {strides = array<i32>} : memref<20x16xf32, #tpu.memory_space<vmem>>, vector<16x16xf32>,
    %c0_122 = arith.constant 0 : index
    %c0_123 = arith.constant 0 : index
    %117 = vector.load %arg4[%c0_122, %c0_123] : memref<20x16xf32, #tpu.memory_space<vmem>>, vector<16x16xf32>
    %c1_124 = arith.constant 1 : index
    %c0_125 = arith.constant 0 : index
    %118 = vector.load %arg4[%c1_124, %c0_125] : memref<20x16xf32, #tpu.memory_space<vmem>>, vector<16x16xf32>
    %119 = arith.maximumf %117, %118 : vector<16x16xf32>
    %c2_126 = arith.constant 2 : index
    %c0_127 = arith.constant 0 : index
    %120 = vector.load %arg4[%c2_126, %c0_127] : memref<20x16xf32, #tpu.memory_space<vmem>>, vector<16x16xf32>
    %121 = arith.maximumf %119, %120 : vector<16x16xf32>
    %c3_128 = arith.constant 3 : index
    %c0_129 = arith.constant 0 : index
    %122 = vector.load %arg4[%c3_128, %c0_129] : memref<20x16xf32, #tpu.memory_space<vmem>>, vector<16x16xf32>
    %123 = arith.maximumf %121, %122 : vector<16x16xf32>
    %c4_130 = arith.constant 4 : index
    %c0_131 = arith.constant 0 : index
    %124 = vector.load %arg4[%c4_130, %c0_131] : memref<20x16xf32, #tpu.memory_space<vmem>>, vector<16x16xf32>
    %125 = arith.maximumf %123, %124 : vector<16x16xf32>
    %126 = arith.cmpf oeq, %105, %125 : vector<16x16xf32>
    %cst_132 = arith.constant dense<true> : vector<16x16xi1>
    %127 = arith.xori %104, %cst_132 : vector<16x16xi1>
    %128 = arith.andi %126, %127 : vector<16x16xi1>
    %129 = arith.ori %80, %128 : vector<16x16xi1>
    %130 = tpu.iota {dimensions = array<i32: 0>} : vector<16x16xi32>
    %131 = tpu.iota {dimensions = array<i32: 1>} : vector<16x16xi32>
    %c2_i32 = arith.constant 2 : i32
    %132 = vector.broadcast %c2_i32 : i32 to vector<16x16xi32>
    %133 = arith.cmpi sge, %130, %132 : vector<16x16xi32>
    %c14_i32 = arith.constant 14 : i32
    %134 = vector.broadcast %c14_i32 : i32 to vector<16x16xi32>
    %135 = arith.cmpi slt, %130, %134 : vector<16x16xi32>
    %136 = arith.andi %133, %135 : vector<16x16xi1>
    %c2_i32_133 = arith.constant 2 : i32
    %137 = vector.broadcast %c2_i32_133 : i32 to vector<16x16xi32>
    %138 = arith.cmpi sge, %131, %137 : vector<16x16xi32>
    %139 = arith.andi %136, %138 : vector<16x16xi1>
    %c14_i32_134 = arith.constant 14 : i32
    %140 = vector.broadcast %c14_i32_134 : i32 to vector<16x16xi32>
    %141 = arith.cmpi slt, %131, %140 : vector<16x16xi32>
    %142 = arith.andi %139, %141 : vector<16x16xi1>
    %143 = arith.andi %129, %142 : vector<16x16xi1>
    %144 = arith.select %143, %1, %10 : vector<16x16xi1>, vector<16x16xf32>
    %c0_i32 = arith.constant 0 : i32
    %145 = vector.broadcast %c0_i32 : i32 to vector<1x1x128xi32>
    %c0_135 = arith.constant 0 : index
    %c0_136 = arith.constant 0 : index
    %c0_137 = arith.constant 0 : index
    %146 = vector.load %arg2[%c0_135, %c0_136, %c0_137] : memref<1x1x128xi32, #tpu.memory_space<vmem>>, vector<1x1x128xi32>
    tpu.vector_store %arg2[%c0_135, %c0_136, %c0_137], %145 {strides = array<i32>} : memref<1x1x128xi32, #tpu.memory_space<vmem>>, vector<1x1x128xi32>,
    %c16_i32 = arith.constant 16 : i32
    %147 = vector.broadcast %c16_i32 : i32 to vector<16x16xi32>
    %148 = arith.muli %130, %147 : vector<16x16xi32>
    %149 = arith.addi %148, %131 : vector<16x16xi32>
    %cst_138 = arith.constant dense<0xFF800000> : vector<16xf32>
    %150 = vector.multi_reduction <maximumf>, %144, %cst_138 [1] : vector<16x16xf32> to vector<16xf32>
    %151 = vector.shape_cast %150 : vector<16xf32> to vector<16x1xf32>
    %cst_139 = arith.constant dense<0xFF800000> : vector<1xf32>
    %152 = vector.multi_reduction <maximumf>, %151, %cst_139 [0] : vector<16x1xf32> to vector<1xf32>
    %153 = vector.shape_cast %152 : vector<1xf32> to vector<1x1xf32>
    %154 = vector.broadcast %153 : vector<1x1xf32> to vector<16x16xf32>
    %155 = arith.cmpf oeq, %144, %154 : vector<16x16xf32>
    %c1073741824_i32 = arith.constant 1073741824 : i32
    %156 = vector.broadcast %c1073741824_i32 : i32 to vector<16x16xi32>
    %157 = arith.select %155, %149, %156 : vector<16x16xi1>, vector<16x16xi32>
    %cst_140 = arith.constant dense<2147483647> : vector<16xi32>
    %158 = vector.multi_reduction <minsi>, %157, %cst_140 [1] : vector<16x16xi32> to vector<16xi32>
    %159 = vector.shape_cast %158 : vector<16xi32> to vector<16x1xi32>
    %cst_141 = arith.constant dense<2147483647> : vector<1xi32>
    %160 = vector.multi_reduction <minsi>, %159, %cst_141 [0] : vector<16x1xi32> to vector<1xi32>
    %161 = vector.shape_cast %160 : vector<1xi32> to vector<1x1xi32>
    %c0_142 = arith.constant 0 : index
    %c0_143 = arith.constant 0 : index
    %c0_144 = arith.constant 0 : index
    %162 = vector.load %arg2[%c0_142, %c0_143, %c0_144] : memref<1x1x128xi32, #tpu.memory_space<vmem>>, vector<1x1x1xi32>
    %163 = vector.shape_cast %162 : vector<1x1x1xi32> to vector<1x1xi32>
    %164 = vector.shape_cast %161 : vector<1x1xi32> to vector<1x1x1xi32>
    tpu.vector_store %arg2[%c0_142, %c0_143, %c0_144], %164 {strides = array<i32>} : memref<1x1x128xi32, #tpu.memory_space<vmem>>, vector<1x1x1xi32>,
    %165 = vector.broadcast %161 : vector<1x1xi32> to vector<16x16xi32>
    %166 = arith.cmpi eq, %149, %165 : vector<16x16xi32>
    %cst_145 = arith.constant 0xFF800000 : f32
    %167 = vector.broadcast %cst_145 : f32 to vector<16x16xf32>
    %168 = arith.select %166, %167, %144 : vector<16x16xi1>, vector<16x16xf32>
    %cst_146 = arith.constant dense<0xFF800000> : vector<16xf32>
    %169 = vector.multi_reduction <maximumf>, %168, %cst_146 [1] : vector<16x16xf32> to vector<16xf32>
    %170 = vector.shape_cast %169 : vector<16xf32> to vector<16x1xf32>
    %cst_147 = arith.constant dense<0xFF800000> : vector<1xf32>
    %171 = vector.multi_reduction <maximumf>, %170, %cst_147 [0] : vector<16x1xf32> to vector<1xf32>
    %172 = vector.shape_cast %171 : vector<1xf32> to vector<1x1xf32>
    %173 = vector.broadcast %172 : vector<1x1xf32> to vector<16x16xf32>
    %174 = arith.cmpf oeq, %168, %173 : vector<16x16xf32>
    %c1073741824_i32_148 = arith.constant 1073741824 : i32
    %175 = vector.broadcast %c1073741824_i32_148 : i32 to vector<16x16xi32>
    %176 = arith.select %174, %149, %175 : vector<16x16xi1>, vector<16x16xi32>
    %cst_149 = arith.constant dense<2147483647> : vector<16xi32>
    %177 = vector.multi_reduction <minsi>, %176, %cst_149 [1] : vector<16x16xi32> to vector<16xi32>
    %178 = vector.shape_cast %177 : vector<16xi32> to vector<16x1xi32>
    %cst_150 = arith.constant dense<2147483647> : vector<1xi32>
    %179 = vector.multi_reduction <minsi>, %178, %cst_150 [0] : vector<16x1xi32> to vector<1xi32>
    %180 = vector.shape_cast %179 : vector<1xi32> to vector<1x1xi32>
    %c0_151 = arith.constant 0 : index
    %c0_152 = arith.constant 0 : index
    %c1_153 = arith.constant 1 : index
    %181 = vector.load %arg2[%c0_151, %c0_152, %c1_153] : memref<1x1x128xi32, #tpu.memory_space<vmem>>, vector<1x1x1xi32>
    %182 = vector.shape_cast %181 : vector<1x1x1xi32> to vector<1x1xi32>
    %183 = vector.shape_cast %180 : vector<1x1xi32> to vector<1x1x1xi32>
    tpu.vector_store %arg2[%c0_151, %c0_152, %c1_153], %183 {strides = array<i32>} : memref<1x1x128xi32, #tpu.memory_space<vmem>>, vector<1x1x1xi32>,
    %184 = vector.broadcast %180 : vector<1x1xi32> to vector<16x16xi32>
    %185 = arith.cmpi eq, %149, %184 : vector<16x16xi32>
    %cst_154 = arith.constant 0xFF800000 : f32
    %186 = vector.broadcast %cst_154 : f32 to vector<16x16xf32>
    %187 = arith.select %185, %186, %168 : vector<16x16xi1>, vector<16x16xf32>
    %cst_155 = arith.constant dense<0xFF800000> : vector<16xf32>
    %188 = vector.multi_reduction <maximumf>, %187, %cst_155 [1] : vector<16x16xf32> to vector<16xf32>
    %189 = vector.shape_cast %188 : vector<16xf32> to vector<16x1xf32>
    %cst_156 = arith.constant dense<0xFF800000> : vector<1xf32>
    %190 = vector.multi_reduction <maximumf>, %189, %cst_156 [0] : vector<16x1xf32> to vector<1xf32>
    %191 = vector.shape_cast %190 : vector<1xf32> to vector<1x1xf32>
    %192 = vector.broadcast %191 : vector<1x1xf32> to vector<16x16xf32>
    %193 = arith.cmpf oeq, %187, %192 : vector<16x16xf32>
    %c1073741824_i32_157 = arith.constant 1073741824 : i32
    %194 = vector.broadcast %c1073741824_i32_157 : i32 to vector<16x16xi32>
    %195 = arith.select %193, %149, %194 : vector<16x16xi1>, vector<16x16xi32>
    %cst_158 = arith.constant dense<2147483647> : vector<16xi32>
    %196 = vector.multi_reduction <minsi>, %195, %cst_158 [1] : vector<16x16xi32> to vector<16xi32>
    %197 = vector.shape_cast %196 : vector<16xi32> to vector<16x1xi32>
    %cst_159 = arith.constant dense<2147483647> : vector<1xi32>
    %198 = vector.multi_reduction <minsi>, %197, %cst_159 [0] : vector<16x1xi32> to vector<1xi32>
    %199 = vector.shape_cast %198 : vector<1xi32> to vector<1x1xi32>
    %c0_160 = arith.constant 0 : index
    %c0_161 = arith.constant 0 : index
    %c2_162 = arith.constant 2 : index
    %200 = vector.load %arg2[%c0_160, %c0_161, %c2_162] : memref<1x1x128xi32, #tpu.memory_space<vmem>>, vector<1x1x1xi32>
    %201 = vector.shape_cast %200 : vector<1x1x1xi32> to vector<1x1xi32>
    %202 = vector.shape_cast %199 : vector<1x1xi32> to vector<1x1x1xi32>
    tpu.vector_store %arg2[%c0_160, %c0_161, %c2_162], %202 {strides = array<i32>} : memref<1x1x128xi32, #tpu.memory_space<vmem>>, vector<1x1x1xi32>,
    %203 = vector.broadcast %199 : vector<1x1xi32> to vector<16x16xi32>
    %204 = arith.cmpi eq, %149, %203 : vector<16x16xi32>
    %cst_163 = arith.constant 0xFF800000 : f32
    %205 = vector.broadcast %cst_163 : f32 to vector<16x16xf32>
    %206 = arith.select %204, %205, %187 : vector<16x16xi1>, vector<16x16xf32>
    %cst_164 = arith.constant dense<0xFF800000> : vector<16xf32>
    %207 = vector.multi_reduction <maximumf>, %206, %cst_164 [1] : vector<16x16xf32> to vector<16xf32>
    %208 = vector.shape_cast %207 : vector<16xf32> to vector<16x1xf32>
    %cst_165 = arith.constant dense<0xFF800000> : vector<1xf32>
    %209 = vector.multi_reduction <maximumf>, %208, %cst_165 [0] : vector<16x1xf32> to vector<1xf32>
    %210 = vector.shape_cast %209 : vector<1xf32> to vector<1x1xf32>
    %211 = vector.broadcast %210 : vector<1x1xf32> to vector<16x16xf32>
    %212 = arith.cmpf oeq, %206, %211 : vector<16x16xf32>
    %c1073741824_i32_166 = arith.constant 1073741824 : i32
    %213 = vector.broadcast %c1073741824_i32_166 : i32 to vector<16x16xi32>
    %214 = arith.select %212, %149, %213 : vector<16x16xi1>, vector<16x16xi32>
    %cst_167 = arith.constant dense<2147483647> : vector<16xi32>
    %215 = vector.multi_reduction <minsi>, %214, %cst_167 [1] : vector<16x16xi32> to vector<16xi32>
    %216 = vector.shape_cast %215 : vector<16xi32> to vector<16x1xi32>
    %cst_168 = arith.constant dense<2147483647> : vector<1xi32>
    %217 = vector.multi_reduction <minsi>, %216, %cst_168 [0] : vector<16x1xi32> to vector<1xi32>
    %218 = vector.shape_cast %217 : vector<1xi32> to vector<1x1xi32>
    %c0_169 = arith.constant 0 : index
    %c0_170 = arith.constant 0 : index
    %c3_171 = arith.constant 3 : index
    %219 = vector.load %arg2[%c0_169, %c0_170, %c3_171] : memref<1x1x128xi32, #tpu.memory_space<vmem>>, vector<1x1x1xi32>
    %220 = vector.shape_cast %219 : vector<1x1x1xi32> to vector<1x1xi32>
    %221 = vector.shape_cast %218 : vector<1x1xi32> to vector<1x1x1xi32>
    tpu.vector_store %arg2[%c0_169, %c0_170, %c3_171], %221 {strides = array<i32>} : memref<1x1x128xi32, #tpu.memory_space<vmem>>, vector<1x1x1xi32>,
    %222 = vector.broadcast %218 : vector<1x1xi32> to vector<16x16xi32>
    %223 = arith.cmpi eq, %149, %222 : vector<16x16xi32>
    %cst_172 = arith.constant 0xFF800000 : f32
    %224 = vector.broadcast %cst_172 : f32 to vector<16x16xf32>
    %225 = arith.select %223, %224, %206 : vector<16x16xi1>, vector<16x16xf32>
    %cst_173 = arith.constant dense<0xFF800000> : vector<16xf32>
    %226 = vector.multi_reduction <maximumf>, %225, %cst_173 [1] : vector<16x16xf32> to vector<16xf32>
    %227 = vector.shape_cast %226 : vector<16xf32> to vector<16x1xf32>
    %cst_174 = arith.constant dense<0xFF800000> : vector<1xf32>
    %228 = vector.multi_reduction <maximumf>, %227, %cst_174 [0] : vector<16x1xf32> to vector<1xf32>
    %229 = vector.shape_cast %228 : vector<1xf32> to vector<1x1xf32>
    %230 = vector.broadcast %229 : vector<1x1xf32> to vector<16x16xf32>
    %231 = arith.cmpf oeq, %225, %230 : vector<16x16xf32>
    %c1073741824_i32_175 = arith.constant 1073741824 : i32
    %232 = vector.broadcast %c1073741824_i32_175 : i32 to vector<16x16xi32>
    %233 = arith.select %231, %149, %232 : vector<16x16xi1>, vector<16x16xi32>
    %cst_176 = arith.constant dense<2147483647> : vector<16xi32>
    %234 = vector.multi_reduction <minsi>, %233, %cst_176 [1] : vector<16x16xi32> to vector<16xi32>
    %235 = vector.shape_cast %234 : vector<16xi32> to vector<16x1xi32>
    %cst_177 = arith.constant dense<2147483647> : vector<1xi32>
    %236 = vector.multi_reduction <minsi>, %235, %cst_177 [0] : vector<16x1xi32> to vector<1xi32>
    %237 = vector.shape_cast %236 : vector<1xi32> to vector<1x1xi32>
    %c0_178 = arith.constant 0 : index
    %c0_179 = arith.constant 0 : index
    %c4_180 = arith.constant 4 : index
    %238 = vector.load %arg2[%c0_178, %c0_179, %c4_180] : memref<1x1x128xi32, #tpu.memory_space<vmem>>, vector<1x1x1xi32>
    %239 = vector.shape_cast %238 : vector<1x1x1xi32> to vector<1x1xi32>
    %240 = vector.shape_cast %237 : vector<1x1xi32> to vector<1x1x1xi32>
    tpu.vector_store %arg2[%c0_178, %c0_179, %c4_180], %240 {strides = array<i32>} : memref<1x1x128xi32, #tpu.memory_space<vmem>>, vector<1x1x1xi32>,
    %241 = vector.broadcast %237 : vector<1x1xi32> to vector<16x16xi32>
    %242 = arith.cmpi eq, %149, %241 : vector<16x16xi32>
    %cst_181 = arith.constant 0xFF800000 : f32
    %243 = vector.broadcast %cst_181 : f32 to vector<16x16xf32>
    %244 = arith.select %242, %243, %225 : vector<16x16xi1>, vector<16x16xf32>
    %cst_182 = arith.constant dense<0xFF800000> : vector<16xf32>
    %245 = vector.multi_reduction <maximumf>, %244, %cst_182 [1] : vector<16x16xf32> to vector<16xf32>
    %246 = vector.shape_cast %245 : vector<16xf32> to vector<16x1xf32>
    %cst_183 = arith.constant dense<0xFF800000> : vector<1xf32>
    %247 = vector.multi_reduction <maximumf>, %246, %cst_183 [0] : vector<16x1xf32> to vector<1xf32>
    %248 = vector.shape_cast %247 : vector<1xf32> to vector<1x1xf32>
    %249 = vector.broadcast %248 : vector<1x1xf32> to vector<16x16xf32>
    %250 = arith.cmpf oeq, %244, %249 : vector<16x16xf32>
    %c1073741824_i32_184 = arith.constant 1073741824 : i32
    %251 = vector.broadcast %c1073741824_i32_184 : i32 to vector<16x16xi32>
    %252 = arith.select %250, %149, %251 : vector<16x16xi1>, vector<16x16xi32>
    %cst_185 = arith.constant dense<2147483647> : vector<16xi32>
    %253 = vector.multi_reduction <minsi>, %252, %cst_185 [1] : vector<16x16xi32> to vector<16xi32>
    %254 = vector.shape_cast %253 : vector<16xi32> to vector<16x1xi32>
    %cst_186 = arith.constant dense<2147483647> : vector<1xi32>
    %255 = vector.multi_reduction <minsi>, %254, %cst_186 [0] : vector<16x1xi32> to vector<1xi32>
    %256 = vector.shape_cast %255 : vector<1xi32> to vector<1x1xi32>
    %c0_187 = arith.constant 0 : index
    %c0_188 = arith.constant 0 : index
    %c5 = arith.constant 5 : index
    %257 = vector.load %arg2[%c0_187, %c0_188, %c5] : memref<1x1x128xi32, #tpu.memory_space<vmem>>, vector<1x1x1xi32>
    %258 = vector.shape_cast %257 : vector<1x1x1xi32> to vector<1x1xi32>
    %259 = vector.shape_cast %256 : vector<1x1xi32> to vector<1x1x1xi32>
    tpu.vector_store %arg2[%c0_187, %c0_188, %c5], %259 {strides = array<i32>} : memref<1x1x128xi32, #tpu.memory_space<vmem>>, vector<1x1x1xi32>,
    %260 = vector.broadcast %256 : vector<1x1xi32> to vector<16x16xi32>
    %261 = arith.cmpi eq, %149, %260 : vector<16x16xi32>
    %cst_189 = arith.constant 0xFF800000 : f32
    %262 = vector.broadcast %cst_189 : f32 to vector<16x16xf32>
    %263 = arith.select %261, %262, %244 : vector<16x16xi1>, vector<16x16xf32>
    %cst_190 = arith.constant dense<0xFF800000> : vector<16xf32>
    %264 = vector.multi_reduction <maximumf>, %263, %cst_190 [1] : vector<16x16xf32> to vector<16xf32>
    %265 = vector.shape_cast %264 : vector<16xf32> to vector<16x1xf32>
    %cst_191 = arith.constant dense<0xFF800000> : vector<1xf32>
    %266 = vector.multi_reduction <maximumf>, %265, %cst_191 [0] : vector<16x1xf32> to vector<1xf32>
    %267 = vector.shape_cast %266 : vector<1xf32> to vector<1x1xf32>
    %268 = vector.broadcast %267 : vector<1x1xf32> to vector<16x16xf32>
    %269 = arith.cmpf oeq, %263, %268 : vector<16x16xf32>
    %c1073741824_i32_192 = arith.constant 1073741824 : i32
    %270 = vector.broadcast %c1073741824_i32_192 : i32 to vector<16x16xi32>
    %271 = arith.select %269, %149, %270 : vector<16x16xi1>, vector<16x16xi32>
    %cst_193 = arith.constant dense<2147483647> : vector<16xi32>
    %272 = vector.multi_reduction <minsi>, %271, %cst_193 [1] : vector<16x16xi32> to vector<16xi32>
    %273 = vector.shape_cast %272 : vector<16xi32> to vector<16x1xi32>
    %cst_194 = arith.constant dense<2147483647> : vector<1xi32>
    %274 = vector.multi_reduction <minsi>, %273, %cst_194 [0] : vector<16x1xi32> to vector<1xi32>
    %275 = vector.shape_cast %274 : vector<1xi32> to vector<1x1xi32>
    %c0_195 = arith.constant 0 : index
    %c0_196 = arith.constant 0 : index
    %c6 = arith.constant 6 : index
    %276 = vector.load %arg2[%c0_195, %c0_196, %c6] : memref<1x1x128xi32, #tpu.memory_space<vmem>>, vector<1x1x1xi32>
    %277 = vector.shape_cast %276 : vector<1x1x1xi32> to vector<1x1xi32>
    %278 = vector.shape_cast %275 : vector<1x1xi32> to vector<1x1x1xi32>
    tpu.vector_store %arg2[%c0_195, %c0_196, %c6], %278 {strides = array<i32>} : memref<1x1x128xi32, #tpu.memory_space<vmem>>, vector<1x1x1xi32>,
    %279 = vector.broadcast %275 : vector<1x1xi32> to vector<16x16xi32>
    %280 = arith.cmpi eq, %149, %279 : vector<16x16xi32>
    %cst_197 = arith.constant 0xFF800000 : f32
    %281 = vector.broadcast %cst_197 : f32 to vector<16x16xf32>
    %282 = arith.select %280, %281, %263 : vector<16x16xi1>, vector<16x16xf32>
    %cst_198 = arith.constant dense<0xFF800000> : vector<16xf32>
    %283 = vector.multi_reduction <maximumf>, %282, %cst_198 [1] : vector<16x16xf32> to vector<16xf32>
    %284 = vector.shape_cast %283 : vector<16xf32> to vector<16x1xf32>
    %cst_199 = arith.constant dense<0xFF800000> : vector<1xf32>
    %285 = vector.multi_reduction <maximumf>, %284, %cst_199 [0] : vector<16x1xf32> to vector<1xf32>
    %286 = vector.shape_cast %285 : vector<1xf32> to vector<1x1xf32>
    %287 = vector.broadcast %286 : vector<1x1xf32> to vector<16x16xf32>
    %288 = arith.cmpf oeq, %282, %287 : vector<16x16xf32>
    %c1073741824_i32_200 = arith.constant 1073741824 : i32
    %289 = vector.broadcast %c1073741824_i32_200 : i32 to vector<16x16xi32>
    %290 = arith.select %288, %149, %289 : vector<16x16xi1>, vector<16x16xi32>
    %cst_201 = arith.constant dense<2147483647> : vector<16xi32>
    %291 = vector.multi_reduction <minsi>, %290, %cst_201 [1] : vector<16x16xi32> to vector<16xi32>
    %292 = vector.shape_cast %291 : vector<16xi32> to vector<16x1xi32>
    %cst_202 = arith.constant dense<2147483647> : vector<1xi32>
    %293 = vector.multi_reduction <minsi>, %292, %cst_202 [0] : vector<16x1xi32> to vector<1xi32>
    %294 = vector.shape_cast %293 : vector<1xi32> to vector<1x1xi32>
    %c0_203 = arith.constant 0 : index
    %c0_204 = arith.constant 0 : index
    %c7 = arith.constant 7 : index
    %295 = vector.load %arg2[%c0_203, %c0_204, %c7] : memref<1x1x128xi32, #tpu.memory_space<vmem>>, vector<1x1x1xi32>
    %296 = vector.shape_cast %295 : vector<1x1x1xi32> to vector<1x1xi32>
    %297 = vector.shape_cast %294 : vector<1x1xi32> to vector<1x1x1xi32>
    tpu.vector_store %arg2[%c0_203, %c0_204, %c7], %297 {strides = array<i32>} : memref<1x1x128xi32, #tpu.memory_space<vmem>>, vector<1x1x1xi32>,
    return
  }
  func.func @transform_0(%arg0: i32) -> (i32, i32, i32) {
    %c0_i32 = arith.constant 0 : i32
    %c0_i32_0 = arith.constant 0 : i32
    %c0_i32_1 = arith.constant 0 : i32
    return %arg0, %c0_i32, %c0_i32_0 : i32, i32, i32
  }
  func.func @transform_1(%arg0: i32) -> (i32, i32, i32) {
    %c0_i32 = arith.constant 0 : i32
    %c0_i32_0 = arith.constant 0 : i32
    %c0_i32_1 = arith.constant 0 : i32
    return %arg0, %c0_i32, %c0_i32_0 : i32, i32, i32
  }
}

</mosaic_0001>

<bundles_post_ra>
// kernel: tpu_custom_call.1
= control target key start
LH: loop header
LB: loop body
LE: loop exit
PB: predicated region body
PF: predicated region fallthrough
CT: control target
= control target key end

     0   :  { %6 = vsyncpa [#allocation5], 0  ;;  %s1788_s0 = inlined_call_operand.hbm [shape: f32[2,16,16], index: 0, kind: input, shape index: {}]   ;;  %s1789_s1 = inlined_call_operand.hbm [shape: s32[2,1,128], index: 1, kind: output, shape index: {}]  }
   0x1   :  { %8 = vsyncpa [#allocation5 + $0x1], 0 }
   0x2   :  { %9 = vsyncpa [#allocation6], 0 }
   0x3   :  { %11 = vsyncpa [#allocation6 + $0x1], 0  ;;  %s1328_s6 = smov 0   ;;  %s1330_s7 = smov 0  }
   0x4   :  { %s1332_s8 = smov 0   ;;  %s1334_s9 = smov 0  }
   0x5 LB: > { %s1349_s10 = sadd.s32 4294967295, %s1303_s9   ;;  %s1124_s11 = sadd.s32 4294967294, %s1303_s9   ;;  %s1303_s9 = sphi %s1334_s9, %s1842_s9   ;;  %s1299_s8 = sphi %s1332_s8, %s1841_s8   ;;  %s1295_s7 = sphi %s1330_s7, %s1840_s7   ;;  %s1291_s6 = sphi %s1328_s6, %s1839_s6  }
   0x6   : > { %s1353_s12 = sadd.s32 1, %s1303_s9   ;;  %s24_s13 = sadd.s32 1, %s1299_s8 }
   0x7   : > { %s21_s14 = ssub.s32 %s1303_s9, %s1353_s12  ;;  %p31_p0 = scmp.ne.s32.totalorder %s1299_s8, %s1295_s7 }
   0x8   : > { %p22_p1 = scmp.eq.s32.totalorder %s21_s14, 0  ;;  %p32_p2 = scmp.eq.s32.totalorder %s1303_s9, 0 }
   0x9   : > { %p37_p3 = scmp.ne.s32.totalorder %s1295_s7, %s1291_s6  ;;  %p38_p4 = scmp.eq.s32.totalorder %s1349_s10, 0 }
   0xa   : > { %s1365_s15 = scalar_select %p22_p1, %s1299_s8, %s24_s13  }
   0xb   : > { %p1367_p5 = por %p32_p2, %p31_p0  ;;  %p1371_p6 = por %p38_p4, %p37_p3 }
   0xc   : > { %p61_p7 = scmp.eq.s32.totalorder %s1349_s10, 1  ;;  %p67_p8 = scmp.eq.s32.totalorder %s1124_s11, 1 }
   0xd   : > { %p1152_p10 = scmp.lt.s32.totalorder %s1303_s9, 2  ;;  %s87_s20 = sand.u32 1, %s1299_s8  }
   0xe   : > { %p1378_p11 = por %p61_p7, %p31_p0  ;;  %p1382_p12 = por %p67_p8, %p37_p3 }
   0xf   : > { %s1139_s21 = sshll.u32 %s1303_s9, 8  ;;  %s1127_s22 = sshll.u32 %s87_s20, 4 }
  0x10   : > { %s1795_s18 = scalar_select %p1378_p11, 1, 0 }
  0x11   : > { %s1796_s19 = scalar_select %p1382_p12, 1, 0 }
  0x12   : > { %s1391_s25 = scalar_lea.hbm %s1788_s0, %s1139_s21  ;;  %s91_s26 = scalar_lea.vmem [#allocation4], %s1127_s22 }
  0x13   : > { %s98_s27 = sshll.u32 %s91_s26, 4  ;;  %p1395_p13 = pnand %p1152_p10, %p1367_p5  ;;  %s1399_s27 = int_to_ptr.vmem [resolvable:$true] %s98_s27 }
  0x14   : > { %s1401_s29 = scalar_lea.sflag [#allocation5], %s87_s20  ;;  %s1207_s30 = scalar_lea.hbm %s1391_s25, 256 }
  0x15   : > { %p1208_p0 = scmp.ne.s32.totalorder %s1391_s25, %s1207_s30  ;;  %p1209_p1 = pneg %p1395_p13 }
  0x16   : > { %s1212_s4 = scalar_lea.hbm %s1788_s0, 512  ;;  %p1213_p4 = scmp.lt.u32.totalorder %s1391_s25, %s1788_s0 }
  0x17   : > { %p1210_p2 = pnand %p1209_p1, %p1208_p0  ;;  %p1214_p5 = scmp.lt.u32.totalorder %s1212_s4, %s1207_s30 }
  0x18   : > { %p1216_p8 = scmp.lt.u32.totalorder %s1207_s30, %s1391_s25 }
  0x19   : > { %p1211_p3 = pneg %p1210_p2  ;;  %p1215_p7 = por %p1214_p5, %p1213_p4 }
  0x1b   : > { %p1217_p10 = por %p1216_p8, %p1215_p7 }
  0x1d   : > { %p1218_p9 = pnand %p1217_p10, %p1211_p3 }
  0x1f   : > { %1221 = shalt.err (!%p1218_p9)
}
  0x20   : > { %s1222_s13 = scalar_lea.vmem %s1399_s27, 256  ;;  %s1305_s14 = smov [#allocation4]  }
  0x21   : > { %p1223_p0 = scmp.ne.s32.totalorder %s1399_s27, %s1222_s13  ;;  %s1227_s16 = sshll.u32 %s1305_s14, 4  ;;  %s1228_s16 = int_to_ptr.vmem [resolvable:$false] %s1227_s16 }
  0x22   : > { %s1229_s20 = scalar_lea.vmem %s1228_s16, 512  ;;  %p1230_p11 = scmp.lt.s32.totalorder %s1399_s27, %s1228_s16 }
  0x23   : > { %p1225_p2 = pnand %p1223_p0, %p1209_p1  ;;  %p1231_p4 = scmp.lt.s32.totalorder %s1229_s20, %s1222_s13 }
  0x25   : > { %p1226_p12 = pneg %p1225_p2  ;;  %p1232_p5 = por %p1231_p4, %p1230_p11 }
  0x27   : > { %p1233_p7 = pnand %p1232_p5, %p1226_p12 }
  0x29   : > { %1236 = shalt.err (!%p1233_p7)
}
  0x2a   : > { %s1306_s21 = smov 128   ;;  %s1307_s22 = smov 8  }
  0x2b   : > { %1147 = dma.hbm_to_vmem [thread:$0]  (!%p1395_p13), %s1391_s25, 256, %s1399_s27, %s1401_s29, %s1306_s21, %s1306_s21, %s1307_s22  }
  0x2c   : > { %p1130_p9 = scmp.ge.s32.totalorder %s1303_s9, 1  ;;  %p106_p1 = scmp.lt.s32.totalorder %s1303_s9, 3 }
  0x2e   : > { %p107_p3 = pnand %p1130_p9, %p106_p1 }
  0x2f   : > { %s1432_s23 = sand.u32 (!%p107_p3), 1, %s1295_s7  }
  0x30   : > { %110 = sbr.rel (%p107_p3) target bundleno = 5211 (0x145b), region = 24  ;;  %s1131_s24 = sshll.u32 (!%p107_p3), %s1432_s23, 4 }
  0x31   : > { %s113_s26 = scalar_lea.sflag (!%p107_p3), [#allocation5], %s1432_s23  ;;  %s116_s30 = scalar_lea.vmem (!%p107_p3), [#allocation4], %s1131_s24 }
  0x37   : > { %1282 = dma.done.wait (%p1371_p6), %s113_s26, 256  }
  0x38   : > { %1284 = vsyncadd (%p1371_p6), %s113_s26, 4294967040  ;;  %vm136_vm0 = vcmask 15360   ;;  %vm139_vm1 = vcmask 162960   ;;  %vm142_vm2 = vcmask 123904   ;;  %v1308_v0 = vmov -inf   ;;  %v1440_v1 = vld [vmem:[%s116_s30] sm:$0xff] }
  0x39   : > { %137 = vst.msk [vmem:[#allocation2] sm:$0xff] %vm136_vm0, %v1308_v0  ;;  %138 = vst.msk [vmem:[#allocation2 + $0x8] sm:$0xff] %vm136_vm0, %v1308_v0  ;;  %s1309_s25 = smov 2   ;;  %v1444_v2 = vld [vmem:[%s116_s30 + $0x8] sm:$0xff]  ;;  %vm153_vm3 = vcmask 146448   ;;  %s1310_s17 = smov 126  }
  0x3a   : > { %143 = vst.msk [vmem:[#allocation3] sm:$0x3] %vm142_vm2, %v1308_v0  ;;  %144 = vst.msk [vmem:[#allocation3 + $0x12] sm:$0x3] %vm142_vm2, %v1308_v0  ;;  %147 = vrot.lane.b32.xlu0 %v1440_v1, %s1309_s25  ;;  %s1311_s27 = smov 127   ;;  %s1312_s28 = smov 125  }
  0x3b   : > { %140 = vst.msk [vmem:[#allocation2] sm:$0xff] %vm139_vm1, %v1308_v0  ;;  %141 = vst.msk [vmem:[#allocation2 + $0x8] sm:$0xff] %vm139_vm1, %v1308_v0  ;;  %s1313_s29 = smov 124   ;;  %vm1791_vm4 = vcmask 130048   ;;  %v1314_v41 = vmov 0.0   ;;  %vm1315_vm9 = vmmov 1  }
  0x3c   : > { %s1610_s2 = scalar_lea.vmem [#allocation7], %s1432_s23  ;;  %s1136_s3 = sshll.u32 %s1349_s10, 4 }
  0x3d   : > { %s1058_s4 = sshll.u32 %s1610_s2, 4  ;;  %s1743_s13 = scalar_lea.hbm %s1789_s1, %s1136_s3  ;;  %s1745_s4 = int_to_ptr.vmem [resolvable:$true] %s1058_s4 }
  0x3e   : > { %149 = vrot.lane.b32.xlu0 %v1444_v2, %s1309_s25  ;;  %s1046_s14 = scalar_lea.sflag [#allocation6], %s1432_s23  ;;  %s1237_s16 = scalar_lea.vmem %s1745_s4, 16 }
  0x3f   : > { %p1238_p6 = scmp.ne.s32.totalorder %s1745_s4, %s1237_s16  ;;  %p1836_p11 = scmp.ne.s32.totalorder %s1795_s18, 0 }
  0x40   : > { %s1317_s10 = smov [#allocation7]  }
  0x41   : > { %p1239_p12 = pnand %p1238_p6, %p1836_p11  ;;  %s1241_s20 = sshll.u32 %s1317_s10, 4  ;;  %s1242_s20 = int_to_ptr.vmem [resolvable:$false] %s1241_s20 }
  0x42   : > { %s1243_s21 = scalar_lea.vmem %s1242_s20, 32  ;;  %p1244_p8 = scmp.lt.s32.totalorder %s1745_s4, %s1242_s20 }
  0x43   : > { %p1240_p13 = pneg %p1239_p12  ;;  %p1245_p10 = scmp.lt.s32.totalorder %s1243_s21, %s1237_s16 }
  0x45   : > { %p1246_p0 = por %p1245_p10, %p1244_p8 }
  0x47   : > { %p1247_p2 = pnand %p1246_p0, %p1240_p13 }
  0xac   : > { %v148_v3 = vpop.permute.xlu0 %147 }
  0xad   : > { %154 = vst.msk [vmem:[#allocation2] sm:$0xff] %vm153_vm3, %v148_v3 }
  0xb0   : > { %v150_v4 = vpop.permute.xlu0 %149 }
  0xb1   : > { %155 = vst.msk [vmem:[#allocation2 + $0x8] sm:$0xff] %vm153_vm3, %v150_v4 }
  0xb4   : > { %v156_v5 = vld [vmem:[#allocation2] sm:$0xff] }
  0xb5   : > { %168 = vrot.lane.b32.xlu0 %v156_v5, %s1310_s17  ;;  %160 = vrot.lane.b32.xlu1 %v156_v5, %s1311_s27 }
  0xb8   : > { %v157_v6 = vld [vmem:[#allocation2 + $0x8] sm:$0xff] }
  0xb9   : > { %176 = vrot.lane.b32.xlu0 %v156_v5, %s1312_s28  ;;  %162 = vrot.lane.b32.xlu1 %v157_v6, %s1311_s27 }
  0xbd   : > { %184 = vrot.lane.b32.xlu0 %v156_v5, %s1313_s29  ;;  %170 = vrot.lane.b32.xlu1 %v157_v6, %s1310_s17 }
  0xc1   : > { %178 = vrot.lane.b32.xlu1 %v157_v6, %s1312_s28 }
  0xc5   : > { %186 = vrot.lane.b32.xlu1 %v157_v6, %s1313_s29 }
 0x127   : > { %v161_v7 = vpop.permute.xlu1 %160  ;;  %v169_v8 = vpop.permute.xlu0 %168 }
 0x128   : > { %v166_v9 = vmax.f32 %v156_v5, %v161_v7 }
 0x12a   : > { %v174_v10 = vmax.f32 %v166_v9, %v169_v8 }
 0x12b   : > { %v163_v11 = vpop.permute.xlu1 %162  ;;  %v177_v12 = vpop.permute.xlu0 %176 }
 0x12c   : > { %v182_v13 = vmax.f32 %v174_v10, %v177_v12  ;;  %v167_v17 = vmax.f32 %v157_v6, %v163_v11 }
 0x12f   : > { %v171_v14 = vpop.permute.xlu1 %170  ;;  %v185_v15 = vpop.permute.xlu0 %184 }
 0x130   : > { %v190_v16 = vmax.f32 %v182_v13, %v185_v15  ;;  %v175_v19 = vmax.f32 %v167_v17, %v171_v14 }
 0x132   : > { %193 = vst.msk [vmem:[#allocation3 + $0x2] sm:$0xff] %vm1791_vm4, %v190_v16 }
 0x133   : > { %v179_v18 = vpop.permute.xlu1 %178 }
 0x134   : > { %v183_v20 = vmax.f32 %v175_v19, %v179_v18 }
 0x137   : > { %v187_v21 = vpop.permute.xlu1 %186 }
 0x138   : > { %v191_v22 = vmax.f32 %v183_v20, %v187_v21 }
 0x139   : > { %v195_v23 = vld [vmem:[#allocation3] sm:$0xff] }
 0x13a   : > { %194 = vst.msk [vmem:[#allocation3 + $0xa] sm:$0xff] %vm1791_vm4, %v191_v22  ;;  %v197_v24 = vld [vmem:[#allocation3 + $0x1] sm:$0xff] }
 0x13b   : > { %v199_v25 = vmax.f32 %v195_v23, %v197_v24  ;;  %v201_v26 = vld [vmem:[#allocation3 + $0x2] sm:$0xff] }
 0x13d   : > { %v203_v29 = vmax.f32 %v199_v25, %v201_v26 }
 0x141   : > { %v196_v27 = vld [vmem:[#allocation3 + $0x8] sm:$0xff] }
 0x142   : > { %v198_v28 = vld [vmem:[#allocation3 + $0x9] sm:$0xff] }
 0x143   : > { %v200_v30 = vmax.f32 %v196_v27, %v198_v28  ;;  %v205_v31 = vld [vmem:[#allocation3 + $0x3] sm:$0xff]  ;;  %v206_v36 = vld [vmem:[#allocation3 + $0xb] sm:$0xff] }
 0x144   : > { %v202_v32 = vld [vmem:[#allocation3 + $0xa] sm:$0xff]  ;;  %v207_v33 = vmax.f32 %v203_v29, %v205_v31 }
 0x145   : > { %v204_v34 = vmax.f32 %v200_v30, %v202_v32  ;;  %v209_v35 = vld [vmem:[#allocation3 + $0x4] sm:$0xff]  ;;  %v210_v39 = vld [vmem:[#allocation3 + $0xc] sm:$0xff] }
 0x146   : > { %v1460_v37 = vmax.f32 %v207_v33, %v209_v35 }
 0x147   : > { %v208_v38 = vmax.f32 %v204_v34, %v206_v36 }
 0x148   : > { %vm213_vm5 = vcmp.eq.f32.partialorder %v1440_v1, %v1460_v37 }
 0x149   : > { %v1462_v40 = vmax.f32 %v208_v38, %v210_v39  ;;  %v1132_v42 = vsel %vm213_vm5, 1.0, %v1314_v41 }
 0x14b   : > { %vm214_vm6 = vcmp.eq.f32.partialorder %v1444_v2, %v1462_v40 }
 0x14c   : > { %v1133_v43 = vsel %vm214_vm6, 1.0, %v1314_v41 }
 0x14d   : > { %v1197_v44 = vpack.i.bf16 %v1133_v43, %v1132_v42 }
 0x14f   : > { %1198 = vrot.lane.b32.xlu0 %v1197_v44, %s1309_s25 }
 0x1c1   : > { %v1199_v45 = vpop.permute.xlu0 %1198 }
 0x1c2   : > { %v1201_v46 = vunpack.i.h.bf16 %v1199_v45  ;;  %v1200_v47 = vunpack.i.l.bf16 %v1199_v45 }
 0x1c4   : > { %228 = vst.msk [vmem:[#allocation2 + $0x8] sm:$0xff] %vm153_vm3, %v1201_v46  ;;  %227 = vst.msk [vmem:[#allocation2] sm:$0xff] %vm153_vm3, %v1200_v47 }
 0x1cb   : > { %v230_v48 = vld [vmem:[#allocation2 + $0x8] sm:$0xff]  ;;  %v229_v49 = vld [vmem:[#allocation2] sm:$0xff] }
 0x1cc   : > { %235 = vrot.lane.b32.xlu0 %v230_v48, %s1311_s27  ;;  %233 = vrot.lane.b32.xlu1 %v229_v49, %s1311_s27 }
 0x1d0   : > { %243 = vrot.lane.b32.xlu0 %v230_v48, %s1310_s17  ;;  %241 = vrot.lane.b32.xlu1 %v229_v49, %s1310_s17 }
 0x1d4   : > { %251 = vrot.lane.b32.xlu0 %v230_v48, %s1312_s28  ;;  %249 = vrot.lane.b32.xlu1 %v229_v49, %s1312_s28 }
 0x1d8   : > { %259 = vrot.lane.b32.xlu0 %v230_v48, %s1313_s29  ;;  %257 = vrot.lane.b32.xlu1 %v229_v49, %s1313_s29 }
 0x23e   : > { %v236_v50 = vpop.permute.xlu0 %235  ;;  %v234_v51 = vpop.permute.xlu1 %233 }
 0x23f   : > { %v240_v54 = vmax.f32 %v230_v48, %v236_v50  ;;  %v239_v55 = vmax.f32 %v229_v49, %v234_v51 }
 0x242   : > { %v244_v52 = vpop.permute.xlu0 %243  ;;  %v242_v53 = vpop.permute.xlu1 %241 }
 0x243   : > { %v248_v58 = vmax.f32 %v240_v54, %v244_v52  ;;  %v247_v59 = vmax.f32 %v239_v55, %v242_v53 }
 0x246   : > { %v252_v56 = vpop.permute.xlu0 %251  ;;  %v250_v57 = vpop.permute.xlu1 %249 }
 0x247   : > { %v256_v60 = vmax.f32 %v248_v58, %v252_v56  ;;  %v255_v61 = vmax.f32 %v247_v59, %v250_v57 }
 0x24a   : > { %v260_v62 = vpop.permute.xlu0 %259  ;;  %v258_v63 = vpop.permute.xlu1 %257 }
 0x24b   : > { %v264_v0 = vmax.f32 %v256_v60, %v260_v62  ;;  %v263_v3 = vmax.f32 %v255_v61, %v258_v63 }
 0x24d   : > { %266 = vst.msk [vmem:[#allocation3 + $0xa] sm:$0xff] %vm1791_vm4, %v264_v0  ;;  %265 = vst.msk [vmem:[#allocation3 + $0x2] sm:$0xff] %vm1791_vm4, %v263_v3  ;;  %v1798_v3 = vmov 0 }
 0x254   : > { %v268_v4 = vld [vmem:[#allocation3 + $0x8] sm:$0xff]  ;;  %v267_v7 = vld [vmem:[#allocation3] sm:$0xff] }
 0x255   : > { %v270_v5 = vld [vmem:[#allocation3 + $0x9] sm:$0xff]  ;;  %v269_v9 = vld [vmem:[#allocation3 + $0x1] sm:$0xff] }
 0x256   : > { %v272_v6 = vmax.f32 %v268_v4, %v270_v5  ;;  %v274_v8 = vld [vmem:[#allocation3 + $0xa] sm:$0xff]  ;;  %v271_v11 = vmax.f32 %v267_v7, %v269_v9  ;;  %v273_v13 = vld [vmem:[#allocation3 + $0x2] sm:$0xff] }
 0x257   : > { %v278_v12 = vld [vmem:[#allocation3 + $0xb] sm:$0xff]  ;;  %v277_v17 = vld [vmem:[#allocation3 + $0x3] sm:$0xff] }
 0x258   : > { %v276_v10 = vmax.f32 %v272_v6, %v274_v8  ;;  %v275_v15 = vmax.f32 %v271_v11, %v273_v13  ;;  %v282_v16 = vld [vmem:[#allocation3 + $0xc] sm:$0xff]  ;;  %v281_v20 = vld [vmem:[#allocation3 + $0x4] sm:$0xff] }
 0x25a   : > { %v280_v14 = vmax.f32 %v276_v10, %v278_v12  ;;  %v279_v19 = vmax.f32 %v275_v15, %v277_v17 }
 0x25c   : > { %v284_v18 = vmax.f32 %v280_v14, %v282_v16  ;;  %v283_v21 = vmax.f32 %v279_v19, %v281_v20 }
 0x25e   : > { %vm286_vm7 = vcmp.gt.f32.partialorder %v284_v18, 0.0  ;;  %vm285_vm8 = vcmp.gt.f32.partialorder %v283_v21, 0.0 }
 0x25f   : > { %v288_v22 = vsel %vm286_vm7, 0.0, %v1444_v2  ;;  %v287_v23 = vsel %vm285_vm8, 0.0, %v1440_v1  ;;  %vm358_vm10 = vmxor %vm286_vm7, %vm1315_vm9 }
 0x260   : > { %293 = vrot.lane.b32.xlu0 %v288_v22, %s1309_s25  ;;  %291 = vrot.lane.b32.xlu1 %v287_v23, %s1309_s25  ;;  %vm357_vm11 = vmxor %vm285_vm8, %vm1315_vm9 }
 0x2d2   : > { %v294_v24 = vpop.permute.xlu0 %293  ;;  %v292_v25 = vpop.permute.xlu1 %291 }
 0x2d3   : > { %298 = vst.msk [vmem:[#allocation2 + $0x8] sm:$0xff] %vm153_vm3, %v294_v24  ;;  %297 = vst.msk [vmem:[#allocation2] sm:$0xff] %vm153_vm3, %v292_v25 }
 0x2da   : > { %v300_v26 = vld [vmem:[#allocation2 + $0x8] sm:$0xff]  ;;  %v299_v27 = vld [vmem:[#allocation2] sm:$0xff] }
 0x2db   : > { %305 = vrot.lane.b32.xlu0 %v300_v26, %s1311_s27  ;;  %303 = vrot.lane.b32.xlu1 %v299_v27, %s1311_s27 }
 0x2df   : > { %313 = vrot.lane.b32.xlu0 %v300_v26, %s1310_s17  ;;  %311 = vrot.lane.b32.xlu1 %v299_v27, %s1310_s17 }
 0x2e3   : > { %321 = vrot.lane.b32.xlu0 %v300_v26, %s1312_s28  ;;  %319 = vrot.lane.b32.xlu1 %v299_v27, %s1312_s28 }
 0x2e7   : > { %329 = vrot.lane.b32.xlu0 %v300_v26, %s1313_s29  ;;  %327 = vrot.lane.b32.xlu1 %v299_v27, %s1313_s29 }
 0x34d   : > { %v306_v28 = vpop.permute.xlu0 %305  ;;  %v304_v29 = vpop.permute.xlu1 %303 }
 0x34e   : > { %v310_v32 = vmax.f32 %v300_v26, %v306_v28  ;;  %v309_v34 = vmax.f32 %v299_v27, %v304_v29 }
 0x351   : > { %v314_v30 = vpop.permute.xlu0 %313  ;;  %v312_v31 = vpop.permute.xlu1 %311 }
 0x352   : > { %v318_v35 = vmax.f32 %v310_v32, %v314_v30  ;;  %v317_v38 = vmax.f32 %v309_v34, %v312_v31 }
 0x355   : > { %v322_v33 = vpop.permute.xlu0 %321  ;;  %v320_v36 = vpop.permute.xlu1 %319 }
 0x356   : > { %v326_v39 = vmax.f32 %v318_v35, %v322_v33  ;;  %v325_v43 = vmax.f32 %v317_v38, %v320_v36 }
 0x359   : > { %v330_v42 = vpop.permute.xlu0 %329  ;;  %v328_v45 = vpop.permute.xlu1 %327 }
 0x35a   : > { %v334_v44 = vmax.f32 %v326_v39, %v330_v42  ;;  %v333_v46 = vmax.f32 %v325_v43, %v328_v45 }
 0x35c   : > { %336 = vst.msk [vmem:[#allocation3 + $0xa] sm:$0xff] %vm1791_vm4, %v334_v44  ;;  %335 = vst.msk [vmem:[#allocation3 + $0x2] sm:$0xff] %vm1791_vm4, %v333_v46 }
 0x363   : > { %v337_v47 = vld [vmem:[#allocation3] sm:$0xff]  ;;  %v338_v48 = vld [vmem:[#allocation3 + $0x8] sm:$0xff] }
 0x364   : > { %v339_v49 = vld [vmem:[#allocation3 + $0x1] sm:$0xff]  ;;  %v340_v50 = vld [vmem:[#allocation3 + $0x9] sm:$0xff] }
 0x365   : > { %v341_v51 = vmax.f32 %v337_v47, %v339_v49  ;;  %v342_v52 = vmax.f32 %v338_v48, %v340_v50  ;;  %v343_v53 = vld [vmem:[#allocation3 + $0x2] sm:$0xff]  ;;  %v344_v54 = vld [vmem:[#allocation3 + $0xa] sm:$0xff] }
 0x366   : > { %v347_v57 = vld [vmem:[#allocation3 + $0x3] sm:$0xff]  ;;  %v348_v58 = vld [vmem:[#allocation3 + $0xb] sm:$0xff] }
 0x367   : > { %v345_v55 = vmax.f32 %v341_v51, %v343_v53  ;;  %v346_v56 = vmax.f32 %v342_v52, %v344_v54  ;;  %v351_v61 = vld [vmem:[#allocation3 + $0x4] sm:$0xff]  ;;  %v352_v62 = vld [vmem:[#allocation3 + $0xc] sm:$0xff]  ;;  %v511_v53 = vlaneseq }
 0x369   : > { %v349_v59 = vmax.f32 %v345_v55, %v347_v57  ;;  %v350_v60 = vmax.f32 %v346_v56, %v348_v58  ;;  %v512_v54 = vshrl.u32 %v511_v53, 7  ;;  %v515_v56 = vand.u32 127, %v511_v53 }
 0x36b   : > { %v353_v63 = vmax.f32 %v349_v59, %v351_v61  ;;  %v354_v0 = vmax.f32 %v350_v60, %v352_v62  ;;  %v513_v55 = vadd.s32 8, %v512_v54  ;;  %v533_v57 = vmul.u32 16, %v512_v54 }
 0x36c   : > { %vm516_vm7 = vcmp.ge.s32.totalorder %v512_v54, 2 }
 0x36d   : > { %vm355_vm12 = vcmp.eq.f32.partialorder %v287_v23, %v353_v63  ;;  %vm356_vm13 = vcmp.eq.f32.partialorder %v288_v22, %v354_v0  ;;  %v534_v58 = vmul.u32 16, %v513_v55  ;;  %v1570_v59 = vadd.s32 %v533_v57, %v515_v56 }
 0x36e   : > { %vm359_vm14 = vmand %vm355_vm12, %vm357_vm11  ;;  %vm525_vm11 = vcmp.lt.s32.totalorder %v515_v56, 14 }
 0x36f   : > { %vm360_vm15 = vmand %vm356_vm13, %vm358_vm10  ;;  %v1572_v60 = vadd.s32 %v534_v58, %v515_v56 }
 0x370   : > { %vm1514_vm0 = vmor %vm213_vm5, %vm359_vm14 }
 0x371   : > { %v1799_v3 = vsel %vm1514_vm0, 4294967295, %v1798_v3  ;;  %vm1521_vm1 = vmor %vm214_vm6, %vm360_vm15  ;;  %v1134_v5 = vsel %vm1514_vm0, 1.0, %v1314_v41  ;;  %vm522_vm6 = vcmp.ge.s32.totalorder %v515_v56, 2 }
 0x372   : > { %v1135_v6 = vsel %vm1521_vm1, 1.0, %v1314_v41  ;;  %vm523_vm12 = vmand %vm516_vm7, %vm522_vm6  ;;  %vm1805_vm7 = vnez %v1799_v3 }
 0x373   : > { %v1202_v37 = vpack.i.bf16 %v1135_v6, %v1134_v5 }
 0x375   : > { %1203 = vrot.lane.b32.xlu1 %v1202_v37, %s1309_s25 }
 0x3e7   : > { %v1204_v7 = vpop.permute.xlu1 %1203 }
 0x3e8   : > { %v1206_v8 = vunpack.i.h.bf16 %v1204_v7  ;;  %v1205_v9 = vunpack.i.l.bf16 %v1204_v7 }
 0x3ea   : > { %376 = vst.msk [vmem:[#allocation2 + $0x8] sm:$0xff] %vm153_vm3, %v1206_v8  ;;  %375 = vst.msk [vmem:[#allocation2] sm:$0xff] %vm153_vm3, %v1205_v9 }
 0x3f1   : > { %v378_v40 = vld [vmem:[#allocation2 + $0x8] sm:$0xff]  ;;  %v377_v10 = vld [vmem:[#allocation2] sm:$0xff] }
 0x3f2   : > { %383 = vrot.lane.b32.xlu1 %v378_v40, %s1311_s27  ;;  %381 = vrot.lane.b32.xlu0 %v377_v10, %s1311_s27 }
 0x3f6   : > { %391 = vrot.lane.b32.xlu1 %v378_v40, %s1310_s17  ;;  %389 = vrot.lane.b32.xlu0 %v377_v10, %s1310_s17 }
 0x3fa   : > { %399 = vrot.lane.b32.xlu1 %v378_v40, %s1312_s28  ;;  %397 = vrot.lane.b32.xlu0 %v377_v10, %s1312_s28 }
 0x3fe   : > { %407 = vrot.lane.b32.xlu1 %v378_v40, %s1313_s29  ;;  %405 = vrot.lane.b32.xlu0 %v377_v10, %s1313_s29 }
 0x464   : > { %v384_v41 = vpop.permute.xlu1 %383  ;;  %v382_v11 = vpop.permute.xlu0 %381 }
 0x465   : > { %v388_v14 = vmax.f32 %v378_v40, %v384_v41  ;;  %v387_v15 = vmax.f32 %v377_v10, %v382_v11 }
 0x468   : > { %v392_v12 = vpop.permute.xlu1 %391  ;;  %v390_v13 = vpop.permute.xlu0 %389 }
 0x469   : > { %v396_v18 = vmax.f32 %v388_v14, %v392_v12  ;;  %v395_v19 = vmax.f32 %v387_v15, %v390_v13 }
 0x46c   : > { %v400_v16 = vpop.permute.xlu1 %399  ;;  %v398_v17 = vpop.permute.xlu0 %397 }
 0x46d   : > { %v404_v20 = vmax.f32 %v396_v18, %v400_v16  ;;  %v403_v21 = vmax.f32 %v395_v19, %v398_v17 }
 0x470   : > { %v408_v22 = vpop.permute.xlu1 %407  ;;  %v406_v23 = vpop.permute.xlu0 %405 }
 0x471   : > { %v412_v24 = vmax.f32 %v404_v20, %v408_v22  ;;  %v411_v25 = vmax.f32 %v403_v21, %v406_v23 }
 0x473   : > { %414 = vst.msk [vmem:[#allocation3 + $0xa] sm:$0xff] %vm1791_vm4, %v412_v24  ;;  %413 = vst.msk [vmem:[#allocation3 + $0x2] sm:$0xff] %vm1791_vm4, %v411_v25 }
 0x47a   : > { %v416_v26 = vld [vmem:[#allocation3 + $0x8] sm:$0xff]  ;;  %v415_v29 = vld [vmem:[#allocation3] sm:$0xff] }
 0x47b   : > { %v418_v27 = vld [vmem:[#allocation3 + $0x9] sm:$0xff]  ;;  %v417_v31 = vld [vmem:[#allocation3 + $0x1] sm:$0xff] }
 0x47c   : > { %v420_v28 = vmax.f32 %v416_v26, %v418_v27  ;;  %v422_v30 = vld [vmem:[#allocation3 + $0xa] sm:$0xff]  ;;  %v419_v33 = vmax.f32 %v415_v29, %v417_v31  ;;  %v421_v35 = vld [vmem:[#allocation3 + $0x2] sm:$0xff] }
 0x47d   : > { %v426_v34 = vld [vmem:[#allocation3 + $0xb] sm:$0xff]  ;;  %v425_v42 = vld [vmem:[#allocation3 + $0x3] sm:$0xff] }
 0x47e   : > { %v424_v32 = vmax.f32 %v420_v28, %v422_v30  ;;  %v423_v38 = vmax.f32 %v419_v33, %v421_v35  ;;  %v430_v39 = vld [vmem:[#allocation3 + $0xc] sm:$0xff]  ;;  %v429_v45 = vld [vmem:[#allocation3 + $0x4] sm:$0xff] }
 0x480   : > { %v428_v36 = vmax.f32 %v424_v32, %v426_v34  ;;  %v427_v44 = vmax.f32 %v423_v38, %v425_v42 }
 0x482   : > { %v432_v43 = vmax.f32 %v428_v36, %v430_v39  ;;  %v1544_v46 = vmax.f32 %v427_v44, %v429_v45 }
 0x484   : > { %vm434_vm2 = vcmp.gt.f32.partialorder %v432_v43, 0.0  ;;  %vm433_vm5 = vcmp.gt.f32.partialorder %v1544_v46, 0.0 }
 0x485   : > { %v1548_v47 = vsel %vm434_vm2, 0.0, %v1444_v2  ;;  %v1556_v48 = vsel %vm433_vm5, 0.0, %v1440_v1  ;;  %vm1578_vm8 = vmxor %vm434_vm2, %vm1315_vm9 }
 0x486   : > { %441 = vrot.lane.b32.xlu1 %v1548_v47, %s1309_s25  ;;  %439 = vrot.lane.b32.xlu0 %v1556_v48, %s1309_s25  ;;  %vm505_vm13 = vmxor %vm433_vm5, %vm1315_vm9  ;;  %vm1804_vm5 = vcmask 130048  }
 0x487   : > { %vm526_vm2 = vmand %vm523_vm12, %vm525_vm11 }
 0x4f8   : > { %v442_v49 = vpop.permute.xlu1 %441  ;;  %v440_v50 = vpop.permute.xlu0 %439 }
 0x4f9   : > { %446 = vst.msk [vmem:[#allocation2 + $0x8] sm:$0xff] %vm153_vm3, %v442_v49  ;;  %445 = vst.msk [vmem:[#allocation2] sm:$0xff] %vm153_vm3, %v440_v50  ;;  %vm519_vm3 = vcmp.lt.s32.totalorder %v513_v55, 14 }
 0x4fa   : > { %vm524_vm10 = vmand %vm519_vm3, %vm522_vm6 }
 0x4fb   : > { %vm527_vm14 = vmand %vm524_vm10, %vm525_vm11 }
 0x500   : > { %v448_v51 = vld [vmem:[#allocation2 + $0x8] sm:$0xff]  ;;  %v447_v52 = vld [vmem:[#allocation2] sm:$0xff] }
 0x501   : > { %453 = vrot.lane.b32.xlu1 %v448_v51, %s1311_s27  ;;  %451 = vrot.lane.b32.xlu0 %v447_v52, %s1311_s27 }
 0x505   : > { %461 = vrot.lane.b32.xlu1 %v448_v51, %s1310_s17  ;;  %459 = vrot.lane.b32.xlu0 %v447_v52, %s1310_s17 }
 0x509   : > { %469 = vrot.lane.b32.xlu1 %v448_v51, %s1312_s28  ;;  %467 = vrot.lane.b32.xlu0 %v447_v52, %s1312_s28 }
 0x50d   : > { %477 = vrot.lane.b32.xlu1 %v448_v51, %s1313_s29  ;;  %475 = vrot.lane.b32.xlu0 %v447_v52, %s1313_s29 }
 0x573   : > { %v454_v61 = vpop.permute.xlu1 %453  ;;  %v452_v62 = vpop.permute.xlu0 %451 }
 0x574   : > { %v458_v5 = vmax.f32 %v448_v51, %v454_v61  ;;  %v457_v37 = vmax.f32 %v447_v52, %v452_v62 }
 0x577   : > { %v462_v63 = vpop.permute.xlu1 %461  ;;  %v460_v0 = vpop.permute.xlu0 %459 }
 0x578   : > { %v466_v7 = vmax.f32 %v458_v5, %v462_v63  ;;  %v465_v9 = vmax.f32 %v457_v37, %v460_v0  ;;  %v1316_v63 = vmov 0  }
 0x579   : > { %532 = vst [vmem:[%s1610_s2] sm:$0x1] %v1316_v63 }
 0x57b   : > { %v470_v6 = vpop.permute.xlu1 %469  ;;  %v468_v8 = vpop.permute.xlu0 %467 }
 0x57c   : > { %v474_v40 = vmax.f32 %v466_v7, %v470_v6  ;;  %v473_v41 = vmax.f32 %v465_v9, %v468_v8 }
 0x57f   : > { %v478_v10 = vpop.permute.xlu1 %477  ;;  %v476_v12 = vpop.permute.xlu0 %475 }
 0x580   : > { %v482_v11 = vmax.f32 %v474_v40, %v478_v10  ;;  %v481_v13 = vmax.f32 %v473_v41, %v476_v12 }
 0x582   : > { %484 = vst.msk [vmem:[#allocation3 + $0xa] sm:$0xff] %vm1791_vm4, %v482_v11  ;;  %483 = vst.msk [vmem:[#allocation3 + $0x2] sm:$0xff] %vm1791_vm4, %v481_v13 }
 0x589   : > { %v486_v14 = vld [vmem:[#allocation3 + $0x8] sm:$0xff]  ;;  %v485_v16 = vld [vmem:[#allocation3] sm:$0xff] }
 0x58a   : > { %v488_v15 = vld [vmem:[#allocation3 + $0x9] sm:$0xff]  ;;  %v487_v18 = vld [vmem:[#allocation3 + $0x1] sm:$0xff] }
 0x58b   : > { %v490_v17 = vmax.f32 %v486_v14, %v488_v15  ;;  %v492_v19 = vld [vmem:[#allocation3 + $0xa] sm:$0xff]  ;;  %v489_v20 = vmax.f32 %v485_v16, %v487_v18  ;;  %v491_v22 = vld [vmem:[#allocation3 + $0x2] sm:$0xff] }
 0x58c   : > { %v496_v24 = vld [vmem:[#allocation3 + $0xb] sm:$0xff]  ;;  %v495_v27 = vld [vmem:[#allocation3 + $0x3] sm:$0xff] }
 0x58d   : > { %v494_v21 = vmax.f32 %v490_v17, %v492_v19  ;;  %v493_v25 = vmax.f32 %v489_v20, %v491_v22  ;;  %v500_v28 = vld [vmem:[#allocation3 + $0xc] sm:$0xff]  ;;  %v499_v31 = vld [vmem:[#allocation3 + $0x4] sm:$0xff] }
 0x58f   : > { %v498_v26 = vmax.f32 %v494_v21, %v496_v24  ;;  %v497_v29 = vmax.f32 %v493_v25, %v495_v27 }
 0x591   : > { %v502_v30 = vmax.f32 %v498_v26, %v500_v28  ;;  %v501_v32 = vmax.f32 %v497_v29, %v499_v31 }
 0x593   : > { %vm504_vm15 = vcmp.eq.f32.partialorder %v1548_v47, %v502_v30  ;;  %vm503_vm3 = vcmp.eq.f32.partialorder %v1556_v48, %v501_v32 }
 0x594   : > { %vm508_vm4 = vmand %vm504_vm15, %vm1578_vm8 }
 0x595   : > { %vm510_vm0 = vmor %vm1521_vm1, %vm508_vm4 }
 0x596   : > { %vm529_vm6 = vmand %vm510_vm0, %vm527_vm14 }
 0x597   : > { %v1592_v33 = vsel %vm529_vm6, %v1444_v2, 0.0  ;;  %vm507_vm9 = vmand %vm503_vm3, %vm505_vm13  ;;  %vm595_vm6 = vcmask 0  }
 0x598   : > { %v540_v34 = vsel %vm1804_vm5, %v1592_v33, -inf  ;;  %vm509_vm10 = vmor %vm1805_vm7, %vm507_vm9 }
 0x599   : > { %541 = vmax.xlane.f32.xlu1 %v540_v34  ;;  %vm528_vm11 = vmand %vm509_vm10, %vm526_vm2 }
 0x59a   : > { %v1599_v35 = vsel %vm528_vm11, %v1440_v1, 0.0  ;;  %vm1806_vm8 = vmmov %vm1804_vm5 }
 0x59b   : > { %v537_v4 = vsel %vm1806_vm8, %v1599_v35, -inf  ;;  %vm1807_vm1 = vmmov %vm1804_vm5 }
 0x59c   : > { %538 = vmax.xlane.f32.xlu0 %v537_v4  ;;  %vm1808_vm12 = vmmov %vm1807_vm1 }
 0x59d   : > { %vm1809_vm10 = vmmov %vm1807_vm1 }
 0x59e   : > { %vm1810_vm11 = vmmov %vm1807_vm1 }
 0x626   : > { %v542_v36 = vpop.xlane.xlu1 %541 }
 0x629   : > { %v539_v38 = vpop.xlane.xlu0 %538 }
 0x62a   : > { %v543_v2 = vmax.f32 %v539_v38, %v542_v36 }
 0x62c   : > { %v544_v39 = vrot.slane %v543_v2, 4 }
 0x62e   : > { %v545_v42 = vmax.f32 %v543_v2, %v544_v39 }
 0x630   : > { %v546_v43 = vrot.slane %v545_v42, 2 }
 0x632   : > { %v547_v44 = vmax.f32 %v545_v42, %v546_v43 }
 0x634   : > { %v548_v45 = vrot.slane %v547_v44, 1 }
 0x636   : > { %v549_v46 = vmax.f32 %v547_v44, %v548_v45 }
 0x638   : > { %vm550_vm4 = vcmp.eq.f32.partialorder %v1599_v35, %v549_v46  ;;  %vm551_vm0 = vcmp.eq.f32.partialorder %v1592_v33, %v549_v46 }
 0x639   : > { %v552_v1 = vsel %vm550_vm4, %v1570_v59, 1073741824  ;;  %v553_v3 = vsel %vm551_vm0, %v1572_v60, 1073741824  ;;  %vm1811_vm0 = vmmov %vm1807_vm1 }
 0x63a   : > { %v554_v47 = vsel %vm1807_vm1, %v552_v1, 2147483647  ;;  %v569_v48 = vsel %vm1808_vm12, %v553_v3, 2147483647  ;;  %vm1812_vm1 = vmmov %vm1811_vm0 }
 0x63b   : > { %v556_v49 = vshra.s32 %v554_v47, 16  ;;  %v571_v51 = vshra.s32 %v569_v48, 16  ;;  %v555_v53 = vand.u32 65535, %v554_v47  ;;  %v570_v56 = vand.u32 65535, %v569_v48 }
 0x63d   : > { %v558_v50 = vcvt.s32.f32 %v556_v49  ;;  %v573_v52 = vcvt.s32.f32 %v571_v51  ;;  %v557_v55 = vcvt.s32.f32 %v555_v53  ;;  %v572_v61 = vcvt.s32.f32 %v570_v56 }
 0x63f   : > { %559 = vmin.xlane.f32.xlu0 %v558_v50 }
 0x643   : > { %574 = vmin.xlane.f32.xlu0 %v573_v52 }
 0x6cc   : > { %v560_v54 = vpop.xlane.xlu0 %559 }
 0x6cd   : > { %vm561_vm13 = vcmp.eq.f32.partialorder %v558_v50, %v560_v54  ;;  %v566_v5 = vcvt.f32.s32 %v560_v54 }
 0x6ce   : > { %v562_v57 = vsel %vm561_vm13, %v557_v55, inf }
 0x6cf   : > { %563 = vmin.xlane.f32.xlu1 %v562_v57  ;;  %v567_v8 = vshll.u32 %v566_v5, 16 }
 0x6d0   : > { %v575_v58 = vpop.xlane.xlu0 %574 }
 0x6d1   : > { %vm576_vm14 = vcmp.eq.f32.partialorder %v573_v52, %v575_v58  ;;  %v581_v6 = vcvt.f32.s32 %v575_v58 }
 0x6d2   : > { %v577_v62 = vsel %vm576_vm14, %v572_v61, inf }
 0x6d3   : > { %578 = vmin.xlane.f32.xlu0 %v577_v62  ;;  %v582_v9 = vshll.u32 %v581_v6, 16 }
 0x75c   : > { %v564_v0 = vpop.xlane.xlu1 %563 }
 0x75d   : > { %v565_v37 = vcvt.f32.s32 %v564_v0 }
 0x75f   : > { %v568_v10 = vadd.s32 %v567_v8, %v565_v37 }
 0x760   : > { %v579_v7 = vpop.xlane.xlu0 %578 }
 0x761   : > { %v580_v40 = vcvt.f32.s32 %v579_v7 }
 0x763   : > { %v583_v41 = vadd.s32 %v582_v9, %v580_v40 }
 0x765   : > { %vm584_vm15 = vcmp.lt.s32.totalorder %v568_v10, %v583_v41 }
 0x766   : > { %v585_v11 = vsel %vm584_vm15, %v568_v10, %v583_v41 }
 0x767   : > { %v586_v12 = vrot.slane %v585_v11, 4 }
 0x769   : > { %vm587_vm2 = vcmp.lt.s32.totalorder %v585_v11, %v586_v12 }
 0x76a   : > { %v588_v13 = vsel %vm587_vm2, %v585_v11, %v586_v12 }
 0x76b   : > { %v589_v14 = vrot.slane %v588_v13, 2 }
 0x76d   : > { %vm590_vm3 = vcmp.lt.s32.totalorder %v588_v13, %v589_v14 }
 0x76e   : > { %v591_v15 = vsel %vm590_vm3, %v588_v13, %v589_v14  ;;  %vm659_vm3 = vcmask 8200  }
 0x76f   : > { %v592_v16 = vrot.slane %v591_v15, 1 }
 0x771   : > { %vm593_vm9 = vcmp.lt.s32.totalorder %v591_v15, %v592_v16 }
 0x772   : > { %v594_v17 = vsel %vm593_vm9, %v591_v15, %v592_v16 }
 0x773   : > { %vm598_vm5 = vcmp.eq.s32.totalorder %v1572_v60, %v594_v17  ;;  %596 = vst.msk [vmem:[%s1610_s2] sm:$0x1] %vm595_vm6, %v594_v17  ;;  %vm597_vm7 = vcmp.eq.s32.totalorder %v1570_v59, %v594_v17 }
 0x774   : > { %v1617_v18 = vsel %vm598_vm5, -inf, %v1592_v33  ;;  %v1620_v19 = vsel %vm597_vm7, -inf, %v1599_v35  ;;  %vm1813_vm7 = vmmov %vm1811_vm0 }
 0x775   : > { %v604_v20 = vsel %vm1809_vm10, %v1617_v18, -inf  ;;  %v601_v21 = vsel %vm1810_vm11, %v1620_v19, -inf  ;;  %vm1814_vm10 = vmmov %vm1811_vm0 }
 0x776   : > { %605 = vmax.xlane.f32.xlu0 %v604_v20  ;;  %602 = vmax.xlane.f32.xlu1 %v601_v21 }
 0x803   : > { %v606_v22 = vpop.xlane.xlu0 %605  ;;  %v603_v23 = vpop.xlane.xlu1 %602 }
 0x804   : > { %v607_v24 = vmax.f32 %v603_v23, %v606_v22 }
 0x806   : > { %v608_v25 = vrot.slane %v607_v24, 4 }
 0x808   : > { %v609_v26 = vmax.f32 %v607_v24, %v608_v25 }
 0x80a   : > { %v610_v27 = vrot.slane %v609_v26, 2 }
 0x80c   : > { %v611_v28 = vmax.f32 %v609_v26, %v610_v27 }
 0x80e   : > { %v612_v29 = vrot.slane %v611_v28, 1 }
 0x810   : > { %v613_v30 = vmax.f32 %v611_v28, %v612_v29 }
 0x812   : > { %vm615_vm8 = vcmp.eq.f32.partialorder %v1617_v18, %v613_v30  ;;  %vm614_vm4 = vcmp.eq.f32.partialorder %v1620_v19, %v613_v30 }
 0x813   : > { %v617_v31 = vsel %vm615_vm8, %v1572_v60, 1073741824  ;;  %v616_v32 = vsel %vm614_vm4, %v1570_v59, 1073741824  ;;  %vm1815_vm4 = vmmov %vm1811_vm0 }
 0x814   : > { %v633_v33 = vsel %vm1811_vm0, %v617_v31, 2147483647  ;;  %v618_v34 = vsel %vm1812_vm1, %v616_v32, 2147483647 }
 0x815   : > { %v635_v35 = vshra.s32 %v633_v33, 16  ;;  %v620_v4 = vshra.s32 %v618_v34, 16  ;;  %v634_v2 = vand.u32 65535, %v633_v33  ;;  %v619_v39 = vand.u32 65535, %v618_v34 }
 0x817   : > { %v637_v36 = vcvt.s32.f32 %v635_v35  ;;  %v622_v38 = vcvt.s32.f32 %v620_v4  ;;  %v636_v44 = vcvt.s32.f32 %v634_v2  ;;  %v621_v45 = vcvt.s32.f32 %v619_v39 }
 0x819   : > { %638 = vmin.xlane.f32.xlu0 %v637_v36  ;;  %623 = vmin.xlane.f32.xlu1 %v622_v38 }
 0x8a6   : > { %v639_v42 = vpop.xlane.xlu0 %638  ;;  %v624_v43 = vpop.xlane.xlu1 %623 }
 0x8a7   : > { %vm640_vm12 = vcmp.eq.f32.partialorder %v637_v36, %v639_v42  ;;  %vm625_vm13 = vcmp.eq.f32.partialorder %v622_v38, %v624_v43  ;;  %v645_v3 = vcvt.f32.s32 %v639_v42  ;;  %v630_v47 = vcvt.f32.s32 %v624_v43 }
 0x8a8   : > { %v641_v46 = vsel %vm640_vm12, %v636_v44, inf  ;;  %v626_v1 = vsel %vm625_vm13, %v621_v45, inf }
 0x8a9   : > { %642 = vmin.xlane.f32.xlu0 %v641_v46  ;;  %627 = vmin.xlane.f32.xlu1 %v626_v1  ;;  %v646_v50 = vshll.u32 %v645_v3, 16  ;;  %v631_v51 = vshll.u32 %v630_v47, 16 }
 0x936   : > { %v643_v48 = vpop.xlane.xlu0 %642  ;;  %v628_v49 = vpop.xlane.xlu1 %627 }
 0x937   : > { %v644_v52 = vcvt.f32.s32 %v643_v48  ;;  %v629_v53 = vcvt.f32.s32 %v628_v49 }
 0x939   : > { %v647_v54 = vadd.s32 %v646_v50, %v644_v52  ;;  %v632_v55 = vadd.s32 %v631_v51, %v629_v53 }
 0x93b   : > { %vm648_vm14 = vcmp.lt.s32.totalorder %v632_v55, %v647_v54 }
 0x93c   : > { %v649_v56 = vsel %vm648_vm14, %v632_v55, %v647_v54 }
 0x93d   : > { %v650_v57 = vrot.slane %v649_v56, 4 }
 0x93f   : > { %vm651_vm15 = vcmp.lt.s32.totalorder %v649_v56, %v650_v57 }
 0x940   : > { %v652_v58 = vsel %vm651_vm15, %v649_v56, %v650_v57 }
 0x941   : > { %v653_v61 = vrot.slane %v652_v58, 2 }
 0x943   : > { %vm654_vm2 = vcmp.lt.s32.totalorder %v652_v58, %v653_v61 }
 0x944   : > { %v655_v62 = vsel %vm654_vm2, %v652_v58, %v653_v61  ;;  %vm723_vm2 = vcmask 16400  }
 0x945   : > { %v656_v63 = vrot.slane %v655_v62, 1 }
 0x947   : > { %vm657_vm6 = vcmp.lt.s32.totalorder %v655_v62, %v656_v63 }
 0x948   : > { %v658_v0 = vsel %vm657_vm6, %v655_v62, %v656_v63 }
 0x949   : > { %vm662_vm9 = vcmp.eq.s32.totalorder %v1572_v60, %v658_v0  ;;  %660 = vst.msk [vmem:[%s1610_s2] sm:$0x1] %vm659_vm3, %v658_v0  ;;  %vm661_vm5 = vcmp.eq.s32.totalorder %v1570_v59, %v658_v0 }
 0x94a   : > { %v1636_v5 = vsel %vm662_vm9, -inf, %v1617_v18  ;;  %v1639_v6 = vsel %vm661_vm5, -inf, %v1620_v19  ;;  %vm1816_vm5 = vmmov %vm1811_vm0 }
 0x94b   : > { %v668_v37 = vsel %vm1813_vm7, %v1636_v5, -inf  ;;  %v665_v7 = vsel %vm1814_vm10, %v1639_v6, -inf  ;;  %vm1817_vm7 = vmmov %vm1811_vm0 }
 0x94c   : > { %669 = vmax.xlane.f32.xlu0 %v668_v37  ;;  %666 = vmax.xlane.f32.xlu1 %v665_v7 }
 0x9d9   : > { %v670_v8 = vpop.xlane.xlu0 %669  ;;  %v667_v9 = vpop.xlane.xlu1 %666 }
 0x9da   : > { %v671_v40 = vmax.f32 %v667_v9, %v670_v8 }
 0x9dc   : > { %v672_v10 = vrot.slane %v671_v40, 4 }
 0x9de   : > { %v673_v41 = vmax.f32 %v671_v40, %v672_v10 }
 0x9e0   : > { %v674_v11 = vrot.slane %v673_v41, 2 }
 0x9e2   : > { %v675_v12 = vmax.f32 %v673_v41, %v674_v11 }
 0x9e4   : > { %v676_v13 = vrot.slane %v675_v12, 1 }
 0x9e6   : > { %v677_v14 = vmax.f32 %v675_v12, %v676_v13 }
 0x9e8   : > { %vm679_vm11 = vcmp.eq.f32.partialorder %v1636_v5, %v677_v14  ;;  %vm678_vm8 = vcmp.eq.f32.partialorder %v1639_v6, %v677_v14 }
 0x9e9   : > { %v681_v15 = vsel %vm679_vm11, %v1572_v60, 1073741824  ;;  %v680_v16 = vsel %vm678_vm8, %v1570_v59, 1073741824  ;;  %vm1818_vm8 = vmmov %vm1811_vm0 }
 0x9ea   : > { %v697_v17 = vsel %vm1815_vm4, %v681_v15, 2147483647  ;;  %v682_v18 = vsel %vm1811_vm0, %v680_v16, 2147483647  ;;  %vm1819_vm4 = vmmov %vm1811_vm0 }
 0x9eb   : > { %v699_v19 = vshra.s32 %v697_v17, 16  ;;  %v684_v20 = vshra.s32 %v682_v18, 16  ;;  %v698_v23 = vand.u32 65535, %v697_v17  ;;  %v683_v24 = vand.u32 65535, %v682_v18 }
 0x9ed   : > { %v701_v21 = vcvt.s32.f32 %v699_v19  ;;  %v686_v22 = vcvt.s32.f32 %v684_v20  ;;  %v700_v27 = vcvt.s32.f32 %v698_v23  ;;  %v685_v28 = vcvt.s32.f32 %v683_v24 }
 0x9ef   : > { %702 = vmin.xlane.f32.xlu0 %v701_v21  ;;  %687 = vmin.xlane.f32.xlu1 %v686_v22 }
 0xa7c   : > { %v703_v25 = vpop.xlane.xlu0 %702  ;;  %v688_v26 = vpop.xlane.xlu1 %687 }
 0xa7d   : > { %vm704_vm1 = vcmp.eq.f32.partialorder %v701_v21, %v703_v25  ;;  %vm689_vm12 = vcmp.eq.f32.partialorder %v686_v22, %v688_v26  ;;  %v709_v31 = vcvt.f32.s32 %v703_v25  ;;  %v694_v32 = vcvt.f32.s32 %v688_v26 }
 0xa7e   : > { %v705_v29 = vsel %vm704_vm1, %v700_v27, inf  ;;  %v690_v30 = vsel %vm689_vm12, %v685_v28, inf }
 0xa7f   : > { %706 = vmin.xlane.f32.xlu0 %v705_v29  ;;  %691 = vmin.xlane.f32.xlu1 %v690_v30  ;;  %v710_v35 = vshll.u32 %v709_v31, 16  ;;  %v695_v4 = vshll.u32 %v694_v32, 16 }
 0xb0c   : > { %v707_v33 = vpop.xlane.xlu0 %706  ;;  %v692_v34 = vpop.xlane.xlu1 %691 }
 0xb0d   : > { %v708_v36 = vcvt.f32.s32 %v707_v33  ;;  %v693_v38 = vcvt.f32.s32 %v692_v34 }
 0xb0f   : > { %v711_v2 = vadd.s32 %v710_v35, %v708_v36  ;;  %v696_v39 = vadd.s32 %v695_v4, %v693_v38 }
 0xb11   : > { %vm712_vm13 = vcmp.lt.s32.totalorder %v696_v39, %v711_v2 }
 0xb12   : > { %v713_v42 = vsel %vm712_vm13, %v696_v39, %v711_v2 }
 0xb13   : > { %v714_v43 = vrot.slane %v713_v42, 4 }
 0xb15   : > { %vm715_vm14 = vcmp.lt.s32.totalorder %v713_v42, %v714_v43 }
 0xb16   : > { %v716_v44 = vsel %vm715_vm14, %v713_v42, %v714_v43 }
 0xb17   : > { %v717_v45 = vrot.slane %v716_v44, 2 }
 0xb19   : > { %vm718_vm15 = vcmp.lt.s32.totalorder %v716_v44, %v717_v45 }
 0xb1a   : > { %v719_v46 = vsel %vm718_vm15, %v716_v44, %v717_v45  ;;  %vm787_vm15 = vcmask 24600  }
 0xb1b   : > { %v720_v1 = vrot.slane %v719_v46, 1 }
 0xb1d   : > { %vm721_vm3 = vcmp.lt.s32.totalorder %v719_v46, %v720_v1 }
 0xb1e   : > { %v722_v3 = vsel %vm721_vm3, %v719_v46, %v720_v1 }
 0xb1f   : > { %vm726_vm6 = vcmp.eq.s32.totalorder %v1572_v60, %v722_v3  ;;  %724 = vst.msk [vmem:[%s1610_s2] sm:$0x1] %vm723_vm2, %v722_v3  ;;  %vm725_vm9 = vcmp.eq.s32.totalorder %v1570_v59, %v722_v3 }
 0xb20   : > { %v1655_v47 = vsel %vm726_vm6, -inf, %v1636_v5  ;;  %v1658_v48 = vsel %vm725_vm9, -inf, %v1639_v6  ;;  %vm1820_vm9 = vmmov %vm1819_vm4 }
 0xb21   : > { %v732_v49 = vsel %vm1816_vm5, %v1655_v47, -inf  ;;  %v729_v50 = vsel %vm1817_vm7, %v1658_v48, -inf  ;;  %vm1821_vm5 = vmmov %vm1819_vm4 }
 0xb22   : > { %733 = vmax.xlane.f32.xlu0 %v732_v49  ;;  %730 = vmax.xlane.f32.xlu1 %v729_v50 }
 0xbaf   : > { %v734_v51 = vpop.xlane.xlu0 %733  ;;  %v731_v52 = vpop.xlane.xlu1 %730 }
 0xbb0   : > { %v735_v53 = vmax.f32 %v731_v52, %v734_v51 }
 0xbb2   : > { %v736_v54 = vrot.slane %v735_v53, 4 }
 0xbb4   : > { %v737_v55 = vmax.f32 %v735_v53, %v736_v54 }
 0xbb6   : > { %v738_v56 = vrot.slane %v737_v55, 2 }
 0xbb8   : > { %v739_v57 = vmax.f32 %v737_v55, %v738_v56 }
 0xbba   : > { %v740_v58 = vrot.slane %v739_v57, 1 }
 0xbbc   : > { %v741_v61 = vmax.f32 %v739_v57, %v740_v58 }
 0xbbe   : > { %vm743_vm10 = vcmp.eq.f32.partialorder %v1655_v47, %v741_v61  ;;  %vm742_vm11 = vcmp.eq.f32.partialorder %v1658_v48, %v741_v61 }
 0xbbf   : > { %v745_v62 = vsel %vm743_vm10, %v1572_v60, 1073741824  ;;  %v744_v63 = vsel %vm742_vm11, %v1570_v59, 1073741824  ;;  %vm1822_vm11 = vmmov %vm1819_vm4 }
 0xbc0   : > { %v761_v0 = vsel %vm1818_vm8, %v745_v62, 2147483647  ;;  %v746_v5 = vsel %vm1819_vm4, %v744_v63, 2147483647  ;;  %vm1823_vm8 = vmmov %vm1819_vm4 }
 0xbc1   : > { %v763_v6 = vshra.s32 %v761_v0, 16  ;;  %v748_v37 = vshra.s32 %v746_v5, 16  ;;  %v762_v9 = vand.u32 65535, %v761_v0  ;;  %v747_v40 = vand.u32 65535, %v746_v5 }
 0xbc3   : > { %v765_v7 = vcvt.s32.f32 %v763_v6  ;;  %v750_v8 = vcvt.s32.f32 %v748_v37  ;;  %v764_v11 = vcvt.s32.f32 %v762_v9  ;;  %v749_v12 = vcvt.s32.f32 %v747_v40 }
 0xbc5   : > { %766 = vmin.xlane.f32.xlu0 %v765_v7  ;;  %751 = vmin.xlane.f32.xlu1 %v750_v8 }
 0xc52   : > { %v767_v10 = vpop.xlane.xlu0 %766  ;;  %v752_v41 = vpop.xlane.xlu1 %751 }
 0xc53   : > { %vm768_vm0 = vcmp.eq.f32.partialorder %v765_v7, %v767_v10  ;;  %vm753_vm1 = vcmp.eq.f32.partialorder %v750_v8, %v752_v41  ;;  %v773_v15 = vcvt.f32.s32 %v767_v10  ;;  %v758_v16 = vcvt.f32.s32 %v752_v41 }
 0xc54   : > { %v769_v13 = vsel %vm768_vm0, %v764_v11, inf  ;;  %v754_v14 = vsel %vm753_vm1, %v749_v12, inf }
 0xc55   : > { %770 = vmin.xlane.f32.xlu0 %v769_v13  ;;  %755 = vmin.xlane.f32.xlu1 %v754_v14  ;;  %v774_v19 = vshll.u32 %v773_v15, 16  ;;  %v759_v20 = vshll.u32 %v758_v16, 16 }
 0xce2   : > { %v771_v17 = vpop.xlane.xlu0 %770  ;;  %v756_v18 = vpop.xlane.xlu1 %755 }
 0xce3   : > { %v772_v21 = vcvt.f32.s32 %v771_v17  ;;  %v757_v22 = vcvt.f32.s32 %v756_v18 }
 0xce5   : > { %v775_v23 = vadd.s32 %v774_v19, %v772_v21  ;;  %v760_v24 = vadd.s32 %v759_v20, %v757_v22 }
 0xce7   : > { %vm776_vm12 = vcmp.lt.s32.totalorder %v760_v24, %v775_v23 }
 0xce8   : > { %v777_v25 = vsel %vm776_vm12, %v760_v24, %v775_v23 }
 0xce9   : > { %v778_v26 = vrot.slane %v777_v25, 4 }
 0xceb   : > { %vm779_vm13 = vcmp.lt.s32.totalorder %v777_v25, %v778_v26 }
 0xcec   : > { %v780_v27 = vsel %vm779_vm13, %v777_v25, %v778_v26 }
 0xced   : > { %v781_v28 = vrot.slane %v780_v27, 2 }
 0xcef   : > { %vm782_vm14 = vcmp.lt.s32.totalorder %v780_v27, %v781_v28 }
 0xcf0   : > { %v783_v29 = vsel %vm782_vm14, %v780_v27, %v781_v28  ;;  %vm851_vm14 = vcmask 32800  }
 0xcf1   : > { %v784_v30 = vrot.slane %v783_v29, 1 }
 0xcf3   : > { %vm785_vm2 = vcmp.lt.s32.totalorder %v783_v29, %v784_v30 }
 0xcf4   : > { %v786_v31 = vsel %vm785_vm2, %v783_v29, %v784_v30 }
 0xcf5   : > { %vm790_vm3 = vcmp.eq.s32.totalorder %v1572_v60, %v786_v31  ;;  %788 = vst.msk [vmem:[%s1610_s2] sm:$0x1] %vm787_vm15, %v786_v31  ;;  %vm789_vm6 = vcmp.eq.s32.totalorder %v1570_v59, %v786_v31 }
 0xcf6   : > { %v1674_v32 = vsel %vm790_vm3, -inf, %v1655_v47  ;;  %v1677_v33 = vsel %vm789_vm6, -inf, %v1658_v48  ;;  %vm1824_vm6 = vmmov %vm1821_vm5 }
 0xcf7   : > { %v796_v34 = vsel %vm1820_vm9, %v1674_v32, -inf  ;;  %v793_v35 = vsel %vm1821_vm5, %v1677_v33, -inf  ;;  %vm1825_vm9 = vmmov %vm1821_vm5 }
 0xcf8   : > { %797 = vmax.xlane.f32.xlu0 %v796_v34  ;;  %794 = vmax.xlane.f32.xlu1 %v793_v35 }
 0xd85   : > { %v798_v4 = vpop.xlane.xlu0 %797  ;;  %v795_v36 = vpop.xlane.xlu1 %794 }
 0xd86   : > { %v799_v38 = vmax.f32 %v795_v36, %v798_v4 }
 0xd88   : > { %v800_v2 = vrot.slane %v799_v38, 4 }
 0xd8a   : > { %v801_v39 = vmax.f32 %v799_v38, %v800_v2 }
 0xd8c   : > { %v802_v42 = vrot.slane %v801_v39, 2 }
 0xd8e   : > { %v803_v43 = vmax.f32 %v801_v39, %v802_v42 }
 0xd90   : > { %v804_v44 = vrot.slane %v803_v43, 1 }
 0xd92   : > { %v805_v45 = vmax.f32 %v803_v43, %v804_v44 }
 0xd94   : > { %vm807_vm7 = vcmp.eq.f32.partialorder %v1674_v32, %v805_v45  ;;  %vm806_vm10 = vcmp.eq.f32.partialorder %v1677_v33, %v805_v45 }
 0xd95   : > { %v809_v46 = vsel %vm807_vm7, %v1572_v60, 1073741824  ;;  %v808_v1 = vsel %vm806_vm10, %v1570_v59, 1073741824  ;;  %vm1826_vm10 = vmmov %vm1824_vm6 }
 0xd96   : > { %v825_v3 = vsel %vm1822_vm11, %v809_v46, 2147483647  ;;  %v810_v47 = vsel %vm1823_vm8, %v808_v1, 2147483647  ;;  %vm1827_vm11 = vmmov %vm1824_vm6 }
 0xd97   : > { %v827_v48 = vshra.s32 %v825_v3, 16  ;;  %v812_v49 = vshra.s32 %v810_v47, 16  ;;  %v826_v52 = vand.u32 65535, %v825_v3  ;;  %v811_v53 = vand.u32 65535, %v810_v47 }
 0xd99   : > { %v829_v50 = vcvt.s32.f32 %v827_v48  ;;  %v814_v51 = vcvt.s32.f32 %v812_v49  ;;  %v828_v56 = vcvt.s32.f32 %v826_v52  ;;  %v813_v57 = vcvt.s32.f32 %v811_v53 }
 0xd9b   : > { %830 = vmin.xlane.f32.xlu0 %v829_v50  ;;  %815 = vmin.xlane.f32.xlu1 %v814_v51 }
 0xe28   : > { %v831_v54 = vpop.xlane.xlu0 %830  ;;  %v816_v55 = vpop.xlane.xlu1 %815 }
 0xe29   : > { %vm832_vm4 = vcmp.eq.f32.partialorder %v829_v50, %v831_v54  ;;  %vm817_vm0 = vcmp.eq.f32.partialorder %v814_v51, %v816_v55  ;;  %v837_v62 = vcvt.f32.s32 %v831_v54  ;;  %v822_v63 = vcvt.f32.s32 %v816_v55 }
 0xe2a   : > { %v833_v58 = vsel %vm832_vm4, %v828_v56, inf  ;;  %v818_v61 = vsel %vm817_vm0, %v813_v57, inf }
 0xe2b   : > { %834 = vmin.xlane.f32.xlu0 %v833_v58  ;;  %819 = vmin.xlane.f32.xlu1 %v818_v61  ;;  %v838_v6 = vshll.u32 %v837_v62, 16  ;;  %v823_v37 = vshll.u32 %v822_v63, 16 }
 0xeb8   : > { %v835_v0 = vpop.xlane.xlu0 %834  ;;  %v820_v5 = vpop.xlane.xlu1 %819 }
 0xeb9   : > { %v836_v7 = vcvt.f32.s32 %v835_v0  ;;  %v821_v8 = vcvt.f32.s32 %v820_v5 }
 0xebb   : > { %v839_v9 = vadd.s32 %v838_v6, %v836_v7  ;;  %v824_v40 = vadd.s32 %v823_v37, %v821_v8 }
 0xebd   : > { %vm840_vm1 = vcmp.lt.s32.totalorder %v824_v40, %v839_v9 }
 0xebe   : > { %v841_v10 = vsel %vm840_vm1, %v824_v40, %v839_v9 }
 0xebf   : > { %v842_v41 = vrot.slane %v841_v10, 4 }
 0xec1   : > { %vm843_vm12 = vcmp.lt.s32.totalorder %v841_v10, %v842_v41 }
 0xec2   : > { %v844_v11 = vsel %vm843_vm12, %v841_v10, %v842_v41 }
 0xec3   : > { %v845_v12 = vrot.slane %v844_v11, 2 }
 0xec5   : > { %vm846_vm13 = vcmp.lt.s32.totalorder %v844_v11, %v845_v12 }
 0xec6   : > { %v847_v13 = vsel %vm846_vm13, %v844_v11, %v845_v12  ;;  %vm915_vm13 = vcmask 41000  }
 0xec7   : > { %v848_v14 = vrot.slane %v847_v13, 1 }
 0xec9   : > { %vm849_vm15 = vcmp.lt.s32.totalorder %v847_v13, %v848_v14 }
 0xeca   : > { %v850_v15 = vsel %vm849_vm15, %v847_v13, %v848_v14 }
 0xecb   : > { %vm854_vm2 = vcmp.eq.s32.totalorder %v1572_v60, %v850_v15  ;;  %852 = vst.msk [vmem:[%s1610_s2] sm:$0x1] %vm851_vm14, %v850_v15  ;;  %vm853_vm3 = vcmp.eq.s32.totalorder %v1570_v59, %v850_v15 }
 0xecc   : > { %v1693_v16 = vsel %vm854_vm2, -inf, %v1674_v32  ;;  %v1696_v17 = vsel %vm853_vm3, -inf, %v1677_v33  ;;  %vm1828_vm3 = vmmov %vm1824_vm6 }
 0xecd   : > { %v860_v18 = vsel %vm1824_vm6, %v1693_v16, -inf  ;;  %v857_v19 = vsel %vm1825_vm9, %v1696_v17, -inf  ;;  %vm1829_vm6 = vmmov %vm1828_vm3 }
 0xece   : > { %861 = vmax.xlane.f32.xlu0 %v860_v18  ;;  %858 = vmax.xlane.f32.xlu1 %v857_v19 }
 0xf5b   : > { %v862_v20 = vpop.xlane.xlu0 %861  ;;  %v859_v21 = vpop.xlane.xlu1 %858 }
 0xf5c   : > { %v863_v22 = vmax.f32 %v859_v21, %v862_v20 }
 0xf5e   : > { %v864_v23 = vrot.slane %v863_v22, 4 }
 0xf60   : > { %v865_v24 = vmax.f32 %v863_v22, %v864_v23 }
 0xf62   : > { %v866_v25 = vrot.slane %v865_v24, 2 }
 0xf64   : > { %v867_v26 = vmax.f32 %v865_v24, %v866_v25 }
 0xf66   : > { %v868_v27 = vrot.slane %v867_v26, 1 }
 0xf68   : > { %v869_v28 = vmax.f32 %v867_v26, %v868_v27 }
 0xf6a   : > { %vm871_vm5 = vcmp.eq.f32.partialorder %v1693_v16, %v869_v28  ;;  %vm870_vm7 = vcmp.eq.f32.partialorder %v1696_v17, %v869_v28 }
 0xf6b   : > { %v873_v29 = vsel %vm871_vm5, %v1572_v60, 1073741824  ;;  %v872_v30 = vsel %vm870_vm7, %v1570_v59, 1073741824  ;;  %vm1830_vm7 = vmmov %vm1828_vm3 }
 0xf6c   : > { %v889_v31 = vsel %vm1826_vm10, %v873_v29, 2147483647  ;;  %v874_v32 = vsel %vm1827_vm11, %v872_v30, 2147483647  ;;  %vm1831_vm10 = vmmov %vm1828_vm3 }
 0xf6d   : > { %v891_v33 = vshra.s32 %v889_v31, 16  ;;  %v876_v34 = vshra.s32 %v874_v32, 16  ;;  %v890_v36 = vand.u32 65535, %v889_v31  ;;  %v875_v38 = vand.u32 65535, %v874_v32 }
 0xf6f   : > { %v893_v35 = vcvt.s32.f32 %v891_v33  ;;  %v878_v4 = vcvt.s32.f32 %v876_v34  ;;  %v892_v42 = vcvt.s32.f32 %v890_v36  ;;  %v877_v43 = vcvt.s32.f32 %v875_v38 }
 0xf71   : > { %894 = vmin.xlane.f32.xlu0 %v893_v35  ;;  %879 = vmin.xlane.f32.xlu1 %v878_v4 }
 0xffe   : > { %v895_v2 = vpop.xlane.xlu0 %894  ;;  %v880_v39 = vpop.xlane.xlu1 %879 }
 0xfff   : > { %vm896_vm8 = vcmp.eq.f32.partialorder %v893_v35, %v895_v2  ;;  %vm881_vm4 = vcmp.eq.f32.partialorder %v878_v4, %v880_v39  ;;  %v901_v46 = vcvt.f32.s32 %v895_v2  ;;  %v886_v1 = vcvt.f32.s32 %v880_v39 }
0x1000   : > { %v897_v44 = vsel %vm896_vm8, %v892_v42, inf  ;;  %v882_v45 = vsel %vm881_vm4, %v877_v43, inf }
0x1001   : > { %898 = vmin.xlane.f32.xlu0 %v897_v44  ;;  %883 = vmin.xlane.f32.xlu1 %v882_v45  ;;  %v902_v48 = vshll.u32 %v901_v46, 16  ;;  %v887_v49 = vshll.u32 %v886_v1, 16 }
0x108e   : > { %v899_v3 = vpop.xlane.xlu0 %898  ;;  %v884_v47 = vpop.xlane.xlu1 %883 }
0x108f   : > { %v900_v50 = vcvt.f32.s32 %v899_v3  ;;  %v885_v51 = vcvt.f32.s32 %v884_v47 }
0x1091   : > { %v903_v52 = vadd.s32 %v902_v48, %v900_v50  ;;  %v888_v53 = vadd.s32 %v887_v49, %v885_v51 }
0x1093   : > { %vm904_vm0 = vcmp.lt.s32.totalorder %v888_v53, %v903_v52 }
0x1094   : > { %v905_v54 = vsel %vm904_vm0, %v888_v53, %v903_v52 }
0x1095   : > { %v906_v55 = vrot.slane %v905_v54, 4 }
0x1097   : > { %vm907_vm1 = vcmp.lt.s32.totalorder %v905_v54, %v906_v55 }
0x1098   : > { %v908_v56 = vsel %vm907_vm1, %v905_v54, %v906_v55 }
0x1099   : > { %v909_v57 = vrot.slane %v908_v56, 2 }
0x109b   : > { %vm910_vm12 = vcmp.lt.s32.totalorder %v908_v56, %v909_v57 }
0x109c   : > { %v911_v58 = vsel %vm910_vm12, %v908_v56, %v909_v57  ;;  %vm979_vm12 = vcmask 49200  }
0x109d   : > { %v912_v61 = vrot.slane %v911_v58, 1 }
0x109f   : > { %vm913_vm14 = vcmp.lt.s32.totalorder %v911_v58, %v912_v61 }
0x10a0   : > { %v914_v62 = vsel %vm913_vm14, %v911_v58, %v912_v61 }
0x10a1   : > { %vm918_vm15 = vcmp.eq.s32.totalorder %v1572_v60, %v914_v62  ;;  %916 = vst.msk [vmem:[%s1610_s2] sm:$0x1] %vm915_vm13, %v914_v62  ;;  %vm917_vm2 = vcmp.eq.s32.totalorder %v1570_v59, %v914_v62 }
0x10a2   : > { %v1712_v63 = vsel %vm918_vm15, -inf, %v1693_v16  ;;  %v1715_v0 = vsel %vm917_vm2, -inf, %v1696_v17  ;;  %vm1832_vm2 = vmmov %vm1828_vm3 }
0x10a3   : > { %v924_v5 = vsel %vm1828_vm3, %v1712_v63, -inf  ;;  %v921_v6 = vsel %vm1829_vm6, %v1715_v0, -inf  ;;  %vm1833_vm3 = vmmov %vm1832_vm2 }
0x10a4   : > { %925 = vmax.xlane.f32.xlu0 %v924_v5  ;;  %922 = vmax.xlane.f32.xlu1 %v921_v6 }
0x1131   : > { %v926_v37 = vpop.xlane.xlu0 %925  ;;  %v923_v7 = vpop.xlane.xlu1 %922 }
0x1132   : > { %v927_v8 = vmax.f32 %v923_v7, %v926_v37 }
0x1134   : > { %v928_v9 = vrot.slane %v927_v8, 4 }
0x1136   : > { %v929_v40 = vmax.f32 %v927_v8, %v928_v9 }
0x1138   : > { %v930_v10 = vrot.slane %v929_v40, 2 }
0x113a   : > { %v931_v41 = vmax.f32 %v929_v40, %v930_v10 }
0x113c   : > { %v932_v11 = vrot.slane %v931_v41, 1 }
0x113e   : > { %v933_v12 = vmax.f32 %v931_v41, %v932_v11 }
0x1140   : > { %vm935_vm9 = vcmp.eq.f32.partialorder %v1712_v63, %v933_v12  ;;  %vm934_vm5 = vcmp.eq.f32.partialorder %v1715_v0, %v933_v12 }
0x1141   : > { %v937_v13 = vsel %vm935_vm9, %v1572_v60, 1073741824  ;;  %v936_v14 = vsel %vm934_vm5, %v1570_v59, 1073741824  ;;  %vm1834_vm5 = vmmov %vm1832_vm2 }
0x1142   : > { %v953_v15 = vsel %vm1830_vm7, %v937_v13, 2147483647  ;;  %v938_v16 = vsel %vm1831_vm10, %v936_v14, 2147483647  ;;  %vm1835_vm7 = vmmov %vm1832_vm2 }
0x1143   : > { %v955_v17 = vshra.s32 %v953_v15, 16  ;;  %v940_v18 = vshra.s32 %v938_v16, 16  ;;  %v954_v21 = vand.u32 65535, %v953_v15  ;;  %v939_v22 = vand.u32 65535, %v938_v16 }
0x1145   : > { %v957_v19 = vcvt.s32.f32 %v955_v17  ;;  %v942_v20 = vcvt.s32.f32 %v940_v18  ;;  %v956_v25 = vcvt.s32.f32 %v954_v21  ;;  %v941_v26 = vcvt.s32.f32 %v939_v22 }
0x1147   : > { %958 = vmin.xlane.f32.xlu0 %v957_v19  ;;  %943 = vmin.xlane.f32.xlu1 %v942_v20 }
0x11d4   : > { %v959_v23 = vpop.xlane.xlu0 %958  ;;  %v944_v24 = vpop.xlane.xlu1 %943 }
0x11d5   : > { %vm960_vm11 = vcmp.eq.f32.partialorder %v957_v19, %v959_v23  ;;  %vm945_vm8 = vcmp.eq.f32.partialorder %v942_v20, %v944_v24  ;;  %v965_v29 = vcvt.f32.s32 %v959_v23  ;;  %v950_v30 = vcvt.f32.s32 %v944_v24 }
0x11d6   : > { %v961_v27 = vsel %vm960_vm11, %v956_v25, inf  ;;  %v946_v28 = vsel %vm945_vm8, %v941_v26, inf }
0x11d7   : > { %962 = vmin.xlane.f32.xlu0 %v961_v27  ;;  %947 = vmin.xlane.f32.xlu1 %v946_v28  ;;  %v966_v33 = vshll.u32 %v965_v29, 16  ;;  %v951_v34 = vshll.u32 %v950_v30, 16 }
0x1264   : > { %v963_v31 = vpop.xlane.xlu0 %962  ;;  %v948_v32 = vpop.xlane.xlu1 %947 }
0x1265   : > { %v964_v35 = vcvt.f32.s32 %v963_v31  ;;  %v949_v4 = vcvt.f32.s32 %v948_v32 }
0x1267   : > { %v967_v36 = vadd.s32 %v966_v33, %v964_v35  ;;  %v952_v38 = vadd.s32 %v951_v34, %v949_v4 }
0x1269   : > { %vm968_vm4 = vcmp.lt.s32.totalorder %v952_v38, %v967_v36 }
0x126a   : > { %v969_v2 = vsel %vm968_vm4, %v952_v38, %v967_v36 }
0x126b   : > { %v970_v39 = vrot.slane %v969_v2, 4 }
0x126d   : > { %vm971_vm0 = vcmp.lt.s32.totalorder %v969_v2, %v970_v39 }
0x126e   : > { %v972_v42 = vsel %vm971_vm0, %v969_v2, %v970_v39 }
0x126f   : > { %v973_v43 = vrot.slane %v972_v42, 2 }
0x1271   : > { %vm974_vm1 = vcmp.lt.s32.totalorder %v972_v42, %v973_v43 }
0x1272   : > { %v975_v44 = vsel %vm974_vm1, %v972_v42, %v973_v43  ;;  %vm1043_vm1 = vcmask 57400  }
0x1273   : > { %v976_v45 = vrot.slane %v975_v44, 1 }
0x1275   : > { %vm977_vm13 = vcmp.lt.s32.totalorder %v975_v44, %v976_v45 }
0x1276   : > { %v978_v46 = vsel %vm977_vm13, %v975_v44, %v976_v45 }
0x1277   : > { %vm982_vm14 = vcmp.eq.s32.totalorder %v1572_v60, %v978_v46  ;;  %980 = vst.msk [vmem:[%s1610_s2] sm:$0x1] %vm979_vm12, %v978_v46  ;;  %vm981_vm15 = vcmp.eq.s32.totalorder %v1570_v59, %v978_v46 }
0x1278   : > { %v984_v1 = vsel %vm982_vm14, -inf, %v1712_v63  ;;  %v983_v3 = vsel %vm981_vm15, -inf, %v1715_v0 }
0x1279   : > { %v988_v47 = vsel %vm1832_vm2, %v984_v1, -inf  ;;  %v985_v48 = vsel %vm1833_vm3, %v983_v3, -inf }
0x127a   : > { %989 = vmax.xlane.f32.xlu0 %v988_v47  ;;  %986 = vmax.xlane.f32.xlu1 %v985_v48 }
0x1307   : > { %v990_v49 = vpop.xlane.xlu0 %989  ;;  %v987_v50 = vpop.xlane.xlu1 %986 }
0x1308   : > { %v991_v51 = vmax.f32 %v987_v50, %v990_v49 }
0x130a   : > { %v992_v52 = vrot.slane %v991_v51, 4 }
0x130c   : > { %v993_v53 = vmax.f32 %v991_v51, %v992_v52 }
0x130e   : > { %v994_v54 = vrot.slane %v993_v53, 2 }
0x1310   : > { %v995_v55 = vmax.f32 %v993_v53, %v994_v54 }
0x1312   : > { %v996_v56 = vrot.slane %v995_v55, 1 }
0x1314   : > { %v997_v57 = vmax.f32 %v995_v55, %v996_v56 }
0x1316   : > { %vm999_vm6 = vcmp.eq.f32.partialorder %v984_v1, %v997_v57  ;;  %vm998_vm9 = vcmp.eq.f32.partialorder %v983_v3, %v997_v57 }
0x1317   : > { %v1001_v58 = vsel %vm999_vm6, %v1572_v60, 1073741824  ;;  %v1000_v61 = vsel %vm998_vm9, %v1570_v59, 1073741824 }
0x1318   : > { %v1017_v62 = vsel %vm1834_vm5, %v1001_v58, 2147483647  ;;  %v1002_v63 = vsel %vm1835_vm7, %v1000_v61, 2147483647 }
0x1319   : > { %v1019_v0 = vshra.s32 %v1017_v62, 16  ;;  %v1004_v5 = vshra.s32 %v1002_v63, 16  ;;  %v1018_v7 = vand.u32 65535, %v1017_v62  ;;  %v1003_v8 = vand.u32 65535, %v1002_v63 }
0x131b   : > { %v1021_v6 = vcvt.s32.f32 %v1019_v0  ;;  %v1006_v37 = vcvt.s32.f32 %v1004_v5  ;;  %v1020_v10 = vcvt.s32.f32 %v1018_v7  ;;  %v1005_v41 = vcvt.s32.f32 %v1003_v8 }
0x131d   : > { %1022 = vmin.xlane.f32.xlu0 %v1021_v6  ;;  %1007 = vmin.xlane.f32.xlu1 %v1006_v37 }
0x13aa   : > { %v1023_v9 = vpop.xlane.xlu0 %1022  ;;  %v1008_v40 = vpop.xlane.xlu1 %1007 }
0x13ab   : > { %vm1024_vm10 = vcmp.eq.f32.partialorder %v1021_v6, %v1023_v9  ;;  %vm1009_vm11 = vcmp.eq.f32.partialorder %v1006_v37, %v1008_v40  ;;  %v1029_v11 = vcvt.f32.s32 %v1023_v9  ;;  %v1014_v12 = vcvt.f32.s32 %v1008_v40 }
0x13ac   : > { %v1025_v60 = vsel %vm1024_vm10, %v1020_v10, inf  ;;  %v1010_v59 = vsel %vm1009_vm11, %v1005_v41, inf }
0x13ad   : > { %1026 = vmin.xlane.f32.xlu0 %v1025_v60  ;;  %1011 = vmin.xlane.f32.xlu1 %v1010_v59  ;;  %v1030_v15 = vshll.u32 %v1029_v11, 16  ;;  %v1015_v16 = vshll.u32 %v1014_v12, 16 }
0x143a   : > { %v1027_v13 = vpop.xlane.xlu0 %1026  ;;  %v1012_v14 = vpop.xlane.xlu1 %1011 }
0x143b   : > { %v1028_v17 = vcvt.f32.s32 %v1027_v13  ;;  %v1013_v18 = vcvt.f32.s32 %v1012_v14 }
0x143d   : > { %v1031_v19 = vadd.s32 %v1030_v15, %v1028_v17  ;;  %v1016_v20 = vadd.s32 %v1015_v16, %v1013_v18 }
0x143f   : > { %vm1032_vm8 = vcmp.lt.s32.totalorder %v1016_v20, %v1031_v19 }
0x1440   : > { %v1033_v21 = vsel %vm1032_vm8, %v1016_v20, %v1031_v19 }
0x1441   : > { %v1034_v22 = vrot.slane %v1033_v21, 4 }
0x1443   : > { %vm1035_vm4 = vcmp.lt.s32.totalorder %v1033_v21, %v1034_v22 }
0x1444   : > { %v1036_v23 = vsel %vm1035_vm4, %v1033_v21, %v1034_v22 }
0x1445   : > { %v1037_v24 = vrot.slane %v1036_v23, 2 }
0x1447   : > { %vm1038_vm0 = vcmp.lt.s32.totalorder %v1036_v23, %v1037_v24 }
0x1448   : > { %v1039_v25 = vsel %vm1038_vm0, %v1036_v23, %v1037_v24 }
0x1449   : > { %v1040_v26 = vrot.slane %v1039_v25, 1 }
0x144b   : > { %vm1041_vm12 = vcmp.lt.s32.totalorder %v1039_v25, %v1040_v26 }
0x144c   : > { %v1042_v27 = vsel %vm1041_vm12, %v1039_v25, %v1040_v26 }
0x144d   : > { %1044 = vst.msk [vmem:[%s1610_s2] sm:$0x1] %vm1043_vm1, %v1042_v27 }
0x144e   : > { %1250 = shalt.err (!%p1247_p2)
}
0x144f   : > { %s1251_s22 = scalar_lea.hbm %s1743_s13, 16  ;;  %s1255_s26 = scalar_lea.hbm %s1789_s1, 32 }
0x1450   : > { %p1252_p4 = scmp.ne.s32.totalorder %s1743_s13, %s1251_s22  ;;  %p1256_p9 = scmp.lt.u32.totalorder %s1743_s13, %s1789_s1 }
0x1451   : > { %p1257_p1 = scmp.lt.u32.totalorder %s1255_s26, %s1251_s22  ;;  %p1259_p6 = scmp.lt.u32.totalorder %s1251_s22, %s1743_s13 }
0x1452   : > { %p1253_p5 = pnand %p1252_p4, %p1836_p11 }
0x1453   : > { %p1258_p3 = por %p1257_p1, %p1256_p9 }
0x1454   : > { %p1254_p7 = pneg %p1253_p5 }
0x1455   : > { %p1260_p12 = por %p1259_p6, %p1258_p3 }
0x1457   : > { %p1261_p13 = pnand %p1260_p12, %p1254_p7 }
0x1459   : > { %1264 = shalt.err (!%p1261_p13)
}
0x145a   : > { %1142 = dma.vmem_to_hbm [thread:$0]  (%p1836_p11), %s1745_s4, 16, %s1743_s13, %s1046_s14  }
0x145b PF: > { %s1070_s17 = sand.u32 1, %s1291_s6   ;;  %p1837_p8 = scmp.ne.s32.totalorder %s1796_s19, 0 }
0x145c   : > { %p1838_p10 = scmp.ge.s32.totalorder %s1303_s9, 2  ;;  %s1071_s27 = scalar_lea.sflag [#allocation6], %s1070_s17 }
0x145e   : > { %p1149_p0 = pnand %p1838_p10, %p1837_p8 }
0x1460   : > { %1286 = dma.done.wait (!%p1149_p0), %s1071_s27, 16  }
0x1461   : > { %1288 = vsyncadd (!%p1149_p0), %s1071_s27, 4294967280  ;;  %p14_p2 = scmp.ge.s32.totalorder %s1353_s12, 4   ;;  %s1839_s6 = smov %s1295_s7 }
0x1462   : > { %s1840_s7 = smov %s1299_s8  ;;  %s1841_s8 = smov %s1365_s15 }
0x1463   : > { %s1842_s9 = smov %s1353_s12  ;;  %16 = sbr.rel (!%p14_p2) target bundleno = 5 (0x5), region = 69 }
0x146a   :  { %1075 = vsyncpa [#allocation5], 1 }
0x146b   :  { %1077 = vsyncpa [#allocation5 + $0x1], 1 }
0x146c   :  { %1078 = vsyncpa [#allocation6], 1 }
0x146d   :  { %1080 = vsyncpa [#allocation6 + $0x1], 1 }

</bundles_post_ra>
